<compile_context>
chip_gen: v7x
topology: tpu7x:2x2x1
jax: 0.10.0
libtpu: 0.0.40
codegen_flags: <defaults>
</compile_context>

<pallas_src>
import functools

import jax
import jax.numpy as jnp
from jax.experimental import pallas as pl
from jax.experimental.pallas import tpu as pltpu


def _conv3x3_rows(xpad_ref, x_valid, w_ref, b_row, h_in, h_out, stride, out_lanes):
    """One 3x3 complex conv (pad=1) + bias + ReLU, fully lane-dense.

    xpad_ref : VMEM scratch (h_in+2, Win*Cc_in) -- H halo only (W padding lives in
               the band weights).  Halo rows + interior rewritten every call.
    x_valid  : (h_in, Win*Cc_in) valid rows; [real|imag] channels flattened into lanes.
    w_ref    : (3, Win*Cc_in, Wout*Cc_out) band weight slabs, one per kh.
    b_row    : (1, Wout*Cc_out) bias tiled over output-W positions (f32).
    Returns  : f32 (h_out, Wout*Cc_out).
    """
    in_lanes = x_valid.shape[1]
    dt = x_valid.dtype
    zrow = jnp.zeros((1, in_lanes), dt)
    # Rewriting the 2 halo rows per step (instead of zero-once under program_id==0)
    # keeps the kernel correct when the "parallel" batch axis is split across cores.
    xpad_ref[0:1, :] = zrow
    xpad_ref[h_in + 1:h_in + 2, :] = zrow
    xpad_ref[1:h_in + 1, :] = x_valid

    span = (h_out - 1) * stride + 1
    acc = jnp.zeros((h_out, out_lanes), jnp.float32)
    for kh in range(3):
        a = xpad_ref[kh:kh + span, :]          # static sublane-offset slice
        if stride > 1:
            a = a[::stride]                    # subsample BEFORE the matmul
        # MXU: (h_out, Win*Cc_in) @ (Win*Cc_in, Wout*Cc_out); N = Wout*Cc_out lanes.
        acc = acc + jnp.dot(a, w_ref[kh], preferred_element_type=jnp.float32)
    return jnp.maximum(acc + b_row, 0.0)       # bias + ReLU in f32


def _complex_block_kernel(x_ref, w1_ref, b1_ref, w2_ref, b2_ref, o_ref,
                          xpad1_ref, xpad2_ref, *, H, Ho, stride, out_lanes):
    # conv1 (pad=1, stride folded into row subsample + band weights) + ReLU.
    y1 = _conv3x3_rows(xpad1_ref, x_ref[0], w1_ref, b1_ref[...],
                       H, Ho, stride, out_lanes)
    # conv2 (pad=1, stride=1) + ReLU; intermediate never leaves VMEM.
    y2 = _conv3x3_rows(xpad2_ref, y1.astype(xpad2_ref.dtype), w2_ref, b2_ref[...],
                       Ho, Ho, 1, out_lanes)
    o_ref[0] = y2.astype(o_ref.dtype)          # lane-dense store


def _band_weights(wr, wi, w_in, w_out, stride):
    """(3,3,Cin,Cout) re/im HWIO weights -> (3, w_in*2Cin, w_out*2Cout) band slabs.

    band[kh, win*2Cin + ci, wo*2Cout + co] = wslab[kh, kw, ci, co]
      where win == wo*stride + kw - 1 (taps landing in the W zero-pad are absent).
    Per-tap complex block is [[wr, wi], [-wi, wr]] over [real|imag] channels.
    """
    top = jnp.concatenate([wr, wi], axis=-1)      # real-input rows: [ wr | wi]
    bot = jnp.concatenate([-wi, wr], axis=-1)     # imag-input rows: [-wi | wr]
    wslab = jnp.concatenate([top, bot], axis=2)   # (3, 3, 2Cin, 2Cout)
    kw = jnp.arange(3)[:, None, None]
    win = jnp.arange(w_in)[None, :, None]
    wout = jnp.arange(w_out)[None, None, :]
    mask = (win == wout * stride + kw - 1).astype(wslab.dtype)   # (3, w_in, w_out)
    band = jnp.einsum('hkio,kpq->hpiqo', wslab, mask)
    return band.reshape(3, w_in * wslab.shape[2], w_out * wslab.shape[3])


def complex_conv_block(x, params, stride=1):
    """ComplexConvBlock.forward.  x: (N, 2, Cin, H, W) -> (N, 2, Cout, Ho, Wo)."""
    assert x.ndim == 5 and x.shape[1] == 2, "Invalid shape!"
    N, _, Cin, H, W = x.shape
    Cout = params["w1r"].shape[-1]
    Cin2, C2c = 2 * Cin, 2 * Cout
    Ho = (H - 1) // stride + 1
    Wo = (W - 1) // stride + 1
    dt = x.dtype

    # Layout glue (XLA side): NCHW real/imag -> NHWC, concat [real|imag] channels,
    # flatten W*2Cin into lanes so the kernel's HBM loads/stores are lane-dense.
    xr = jnp.transpose(x[:, 0], (0, 2, 3, 1))
    xi = jnp.transpose(x[:, 1], (0, 2, 3, 1))
    xcat = jnp.concatenate([xr, xi], axis=-1).reshape(N, H, W * Cin2)

    w1 = _band_weights(params["w1r"], params["w1i"], W, Wo, stride).astype(dt)
    w2 = _band_weights(params["w2r"], params["w2i"], Wo, Wo, 1).astype(dt)
    b1 = jnp.tile(jnp.concatenate([params["b1r"] - params["b1i"],
                                   params["b1r"] + params["b1i"]]), Wo)
    b2 = jnp.tile(jnp.concatenate([params["b2r"] - params["b2i"],
                                   params["b2r"] + params["b2i"]]), Wo)
    b1 = b1.reshape(1, Wo * C2c).astype(jnp.float32)
    b2 = b2.reshape(1, Wo * C2c).astype(jnp.float32)

    kernel = functools.partial(_complex_block_kernel, H=H, Ho=Ho,
                               stride=stride, out_lanes=Wo * C2c)

    out2d = pl.pallas_call(
        kernel,
        out_shape=jax.ShapeDtypeStruct((N, Ho, Wo * C2c), dt),
        grid_spec=pltpu.PrefetchScalarGridSpec(
            num_scalar_prefetch=0,
            grid=(N,),
            in_specs=[
                pl.BlockSpec((1, H, W * Cin2), lambda n: (n, 0, 0)),
                pl.BlockSpec((3, W * Cin2, Wo * C2c), lambda n: (0, 0, 0)),
                pl.BlockSpec((1, Wo * C2c), lambda n: (0, 0)),
                pl.BlockSpec((3, Wo * C2c, Wo * C2c), lambda n: (0, 0, 0)),
                pl.BlockSpec((1, Wo * C2c), lambda n: (0, 0)),
            ],
            out_specs=pl.BlockSpec((1, Ho, Wo * C2c), lambda n: (n, 0, 0)),
            scratch_shapes=[
                pltpu.VMEM((H + 2, W * Cin2), dt),     # conv1 H-halo buffer
                pltpu.VMEM((Ho + 2, Wo * C2c), dt),    # conv2 H-halo buffer
            ],
        ),
        compiler_params=pltpu.CompilerParams(
            dimension_semantics=("parallel",),
            vmem_limit_bytes=32 * 1024 * 1024),
    )(xcat, w1, b1, w2, b2)

    # Glue back: (N, Ho, Wo*2Cout) -> (N, 2, Cout, Ho, Wo).
    out = out2d.reshape(N, Ho, Wo, C2c)
    zr = jnp.transpose(out[..., :Cout], (0, 3, 1, 2))
    zi = jnp.transpose(out[..., Cout:], (0, 3, 1, 2))
    return jnp.stack([zr, zi], axis=1)


def init_params(key, in_chans, out_chans):
    """Deterministic synthetic weights.  Conv weights stored HWIO: (3, 3, Cin, Cout)."""
    ks = jax.random.split(key, 8)
    scale1 = 1.0 / jnp.sqrt(in_chans * 9.0)
    scale2 = 1.0 / jnp.sqrt(out_chans * 9.0)
    return {
        "w1r": scale1 * jax.random.normal(ks[0], (3, 3, in_chans, out_chans), jnp.float32),
        "w1i": scale1 * jax.random.normal(ks[1], (3, 3, in_chans, out_chans), jnp.float32),
        "b1r": scale1 * jax.random.normal(ks[2], (out_chans,), jnp.float32),
        "b1i": scale1 * jax.random.normal(ks[3], (out_chans,), jnp.float32),
        "w2r": scale2 * jax.random.normal(ks[4], (3, 3, out_chans, out_chans), jnp.float32),
        "w2i": scale2 * jax.random.normal(ks[5], (3, 3, out_chans, out_chans), jnp.float32),
        "b2r": scale2 * jax.random.normal(ks[6], (out_chans,), jnp.float32),
        "b2i": scale2 * jax.random.normal(ks[7], (out_chans,), jnp.float32),
    }


# ---------- pure-JAX reference (for correctness check) ----------
def _conv_ref(x_nhwc, w_hwio, b, stride):
    y = jax.lax.conv_general_dilated(
        x_nhwc, w_hwio, window_strides=(stride, stride), padding=((1, 1), (1, 1)),
        dimension_numbers=("NHWC", "HWIO", "NHWC"))
    return y + b[None, None, None, :]


def complex_conv_block_ref(x, params, stride=1):
    xr = jnp.transpose(x[:, 0], (0, 2, 3, 1))
    xi = jnp.transpose(x[:, 1], (0, 2, 3, 1))

    def cconv_relu(xr, xi, wr, wi, br, bi, s):
        o_r = _conv_ref(xr, wr, br, s) - _conv_ref(xi, wi, bi, s)
        o_i = _conv_ref(xi, wr, br, s) + _conv_ref(xr, wi, bi, s)
        return jnp.maximum(o_r, 0.0), jnp.maximum(o_i, 0.0)

    yr, yi = cconv_relu(xr, xi, params["w1r"], params["w1i"],
                        params["b1r"], params["b1i"], stride)
    zr, zi = cconv_relu(yr, yi, params["w2r"], params["w2i"],
                        params["b2r"], params["b2i"], 1)
    zr = jnp.transpose(zr, (0, 3, 1, 2))
    zi = jnp.transpose(zi, (0, 3, 1, 2))
    return jnp.stack([zr, zi], axis=1)


if __name__ == "__main__":
    N, in_chans, out_chans, H, W = 2, 4, 8, 16, 16
    stride = 1

    key = jax.random.PRNGKey(0)
    kx, kp = jax.random.split(key)
    x = jax.random.normal(kx, (N, 2, in_chans, H, W), jnp.float32)
    params = init_params(kp, in_chans, out_chans)

    fn = jax.jit(functools.partial(complex_conv_block, stride=stride))
    out = jax.block_until_ready(fn(x, params))

    ref = complex_conv_block_ref(x, params, stride=stride)
    assert out.shape == (N, 2, out_chans, H, W), out.shape
    assert jnp.allclose(out, ref, rtol=1e-4, atol=1e-4), "mismatch vs JAX reference"

    print("KERNEL_OK")
</pallas_src>

<mosaic_0001>
module attributes {stable_mosaic.version = 11 : i64} {
  func.func @_complex_block_kernel(%arg0: i32, %arg1: memref<1x16x128xf32, #tpu.memory_space<vmem>>, %arg2: memref<3x128x256xf32, #tpu.memory_space<vmem>>, %arg3: memref<1x256xf32, #tpu.memory_space<vmem>>, %arg4: memref<3x256x256xf32, #tpu.memory_space<vmem>>, %arg5: memref<1x256xf32, #tpu.memory_space<vmem>>, %arg6: memref<1x16x256xf32, #tpu.memory_space<vmem>>, %arg7: memref<18x128xf32, #tpu.memory_space<vmem>>, %arg8: memref<18x256xf32, #tpu.memory_space<vmem>>) attributes {dimension_semantics = [#tpu.dimension_semantics<parallel>], iteration_bounds = array<i64: 2>, scalar_prefetch = 0 : i64, scratch_operands = 2 : i64, tpu.core_type = #tpu.core_type<tc>, window_params = [{transform_indices = @transform_0, window_bounds = array<i64: 1, 16, 128>}, {pipeline_mode = #tpu.pipeline_mode<synchronous>, transform_indices = @transform_1, window_bounds = array<i64: 3, 128, 256>}, {pipeline_mode = #tpu.pipeline_mode<synchronous>, transform_indices = @transform_2, window_bounds = array<i64: 1, 256>}, {pipeline_mode = #tpu.pipeline_mode<synchronous>, transform_indices = @transform_3, window_bounds = array<i64: 3, 256, 256>}, {pipeline_mode = #tpu.pipeline_mode<synchronous>, transform_indices = @transform_4, window_bounds = array<i64: 1, 256>}, {transform_indices = @transform_5, window_bounds = array<i64: 1, 16, 256>}]} {
    %c0 = arith.constant 0 : index
    %c0_0 = arith.constant 0 : index
    %c0_1 = arith.constant 0 : index
    %0 = vector.load %arg1[%c0, %c0_0, %c0_1] : memref<1x16x128xf32, #tpu.memory_space<vmem>>, vector<1x16x128xf32>
    %1 = vector.shape_cast %0 : vector<1x16x128xf32> to vector<16x128xf32>
    %c0_2 = arith.constant 0 : index
    %c0_3 = arith.constant 0 : index
    %2 = vector.load %arg3[%c0_2, %c0_3] : memref<1x256xf32, #tpu.memory_space<vmem>>, vector<1x256xf32>
    %cst = arith.constant 0.000000e+00 : f32
    %3 = vector.broadcast %cst : f32 to vector<1x128xf32>
    %c0_4 = arith.constant 0 : index
    %c0_5 = arith.constant 0 : index
    %4 = vector.load %arg7[%c0_4, %c0_5] : memref<18x128xf32, #tpu.memory_space<vmem>>, vector<1x128xf32>
    tpu.vector_store %arg7[%c0_4, %c0_5], %3 {strides = array<i32>} : memref<18x128xf32, #tpu.memory_space<vmem>>, vector<1x128xf32>,
    %c17 = arith.constant 17 : index
    %c0_6 = arith.constant 0 : index
    %5 = vector.load %arg7[%c17, %c0_6] : memref<18x128xf32, #tpu.memory_space<vmem>>, vector<1x128xf32>
    tpu.vector_store %arg7[%c17, %c0_6], %3 {strides = array<i32>} : memref<18x128xf32, #tpu.memory_space<vmem>>, vector<1x128xf32>,
    %c1 = arith.constant 1 : index
    %c0_7 = arith.constant 0 : index
    %6 = vector.load %arg7[%c1, %c0_7] : memref<18x128xf32, #tpu.memory_space<vmem>>, vector<16x128xf32>
    tpu.vector_store %arg7[%c1, %c0_7], %1 {strides = array<i32>} : memref<18x128xf32, #tpu.memory_space<vmem>>, vector<16x128xf32>,
    %cst_8 = arith.constant 0.000000e+00 : f32
    %7 = vector.broadcast %cst_8 : f32 to vector<16x256xf32>
    %c0_9 = arith.constant 0 : index
    %c0_10 = arith.constant 0 : index
    %8 = vector.load %arg7[%c0_9, %c0_10] : memref<18x128xf32, #tpu.memory_space<vmem>>, vector<16x128xf32>
    %c0_11 = arith.constant 0 : index
    %c0_12 = arith.constant 0 : index
    %c0_13 = arith.constant 0 : index
    %9 = vector.load %arg2[%c0_11, %c0_12, %c0_13] : memref<3x128x256xf32, #tpu.memory_space<vmem>>, vector<1x128x256xf32>
    %10 = vector.shape_cast %9 : vector<1x128x256xf32> to vector<128x256xf32>
    %cst_14 = arith.constant dense<0.000000e+00> : vector<16x256xf32>
    %11 = tpu.matmul %8, %10, %cst_14 {dimension_numbers = #tpu.dot_dimension_numbers<[1], [0], [0], [1], [0, 0, 1, 1], [], []>} : vector<16x128xf32>, vector<128x256xf32>, vector<16x256xf32> -> vector<16x256xf32>
    %12 = arith.addf %7, %11 : vector<16x256xf32>
    %c1_15 = arith.constant 1 : index
    %c0_16 = arith.constant 0 : index
    %13 = vector.load %arg7[%c1_15, %c0_16] : memref<18x128xf32, #tpu.memory_space<vmem>>, vector<16x128xf32>
    %c1_17 = arith.constant 1 : index
    %c0_18 = arith.constant 0 : index
    %c0_19 = arith.constant 0 : index
    %14 = vector.load %arg2[%c1_17, %c0_18, %c0_19] : memref<3x128x256xf32, #tpu.memory_space<vmem>>, vector<1x128x256xf32>
    %15 = vector.shape_cast %14 : vector<1x128x256xf32> to vector<128x256xf32>
    %cst_20 = arith.constant dense<0.000000e+00> : vector<16x256xf32>
    %16 = tpu.matmul %13, %15, %cst_20 {dimension_numbers = #tpu.dot_dimension_numbers<[1], [0], [0], [1], [0, 0, 1, 1], [], []>} : vector<16x128xf32>, vector<128x256xf32>, vector<16x256xf32> -> vector<16x256xf32>
    %17 = arith.addf %12, %16 : vector<16x256xf32>
    %c2 = arith.constant 2 : index
    %c0_21 = arith.constant 0 : index
    %18 = vector.load %arg7[%c2, %c0_21] : memref<18x128xf32, #tpu.memory_space<vmem>>, vector<16x128xf32>
    %c2_22 = arith.constant 2 : index
    %c0_23 = arith.constant 0 : index
    %c0_24 = arith.constant 0 : index
    %19 = vector.load %arg2[%c2_22, %c0_23, %c0_24] : memref<3x128x256xf32, #tpu.memory_space<vmem>>, vector<1x128x256xf32>
    %20 = vector.shape_cast %19 : vector<1x128x256xf32> to vector<128x256xf32>
    %cst_25 = arith.constant dense<0.000000e+00> : vector<16x256xf32>
    %21 = tpu.matmul %18, %20, %cst_25 {dimension_numbers = #tpu.dot_dimension_numbers<[1], [0], [0], [1], [0, 0, 1, 1], [], []>} : vector<16x128xf32>, vector<128x256xf32>, vector<16x256xf32> -> vector<16x256xf32>
    %22 = arith.addf %17, %21 : vector<16x256xf32>
    %23 = vector.broadcast %2 : vector<1x256xf32> to vector<16x256xf32>
    %24 = arith.addf %22, %23 : vector<16x256xf32>
    %cst_26 = arith.constant 0.000000e+00 : f32
    %25 = vector.broadcast %cst_26 : f32 to vector<16x256xf32>
    %26 = arith.maximumf %24, %25 : vector<16x256xf32>
    %c0_27 = arith.constant 0 : index
    %c0_28 = arith.constant 0 : index
    %27 = vector.load %arg5[%c0_27, %c0_28] : memref<1x256xf32, #tpu.memory_space<vmem>>, vector<1x256xf32>
    %cst_29 = arith.constant 0.000000e+00 : f32
    %28 = vector.broadcast %cst_29 : f32 to vector<1x256xf32>
    %c0_30 = arith.constant 0 : index
    %c0_31 = arith.constant 0 : index
    %29 = vector.load %arg8[%c0_30, %c0_31] : memref<18x256xf32, #tpu.memory_space<vmem>>, vector<1x256xf32>
    tpu.vector_store %arg8[%c0_30, %c0_31], %28 {strides = array<i32>} : memref<18x256xf32, #tpu.memory_space<vmem>>, vector<1x256xf32>,
    %c17_32 = arith.constant 17 : index
    %c0_33 = arith.constant 0 : index
    %30 = vector.load %arg8[%c17_32, %c0_33] : memref<18x256xf32, #tpu.memory_space<vmem>>, vector<1x256xf32>
    tpu.vector_store %arg8[%c17_32, %c0_33], %28 {strides = array<i32>} : memref<18x256xf32, #tpu.memory_space<vmem>>, vector<1x256xf32>,
    %c1_34 = arith.constant 1 : index
    %c0_35 = arith.constant 0 : index
    %31 = vector.load %arg8[%c1_34, %c0_35] : memref<18x256xf32, #tpu.memory_space<vmem>>, vector<16x256xf32>
    tpu.vector_store %arg8[%c1_34, %c0_35], %26 {strides = array<i32>} : memref<18x256xf32, #tpu.memory_space<vmem>>, vector<16x256xf32>,
    %cst_36 = arith.constant 0.000000e+00 : f32
    %32 = vector.broadcast %cst_36 : f32 to vector<16x256xf32>
    %c0_37 = arith.constant 0 : index
    %c0_38 = arith.constant 0 : index
    %33 = vector.load %arg8[%c0_37, %c0_38] : memref<18x256xf32, #tpu.memory_space<vmem>>, vector<16x256xf32>
    %c0_39 = arith.constant 0 : index
    %c0_40 = arith.constant 0 : index
    %c0_41 = arith.constant 0 : index
    %34 = vector.load %arg4[%c0_39, %c0_40, %c0_41] : memref<3x256x256xf32, #tpu.memory_space<vmem>>, vector<1x256x256xf32>
    %35 = vector.shape_cast %34 : vector<1x256x256xf32> to vector<256x256xf32>
    %cst_42 = arith.constant dense<0.000000e+00> : vector<16x256xf32>
    %36 = tpu.matmul %33, %35, %cst_42 {dimension_numbers = #tpu.dot_dimension_numbers<[1], [0], [0], [1], [0, 0, 1, 1], [], []>} : vector<16x256xf32>, vector<256x256xf32>, vector<16x256xf32> -> vector<16x256xf32>
    %37 = arith.addf %32, %36 : vector<16x256xf32>
    %c1_43 = arith.constant 1 : index
    %c0_44 = arith.constant 0 : index
    %38 = vector.load %arg8[%c1_43, %c0_44] : memref<18x256xf32, #tpu.memory_space<vmem>>, vector<16x256xf32>
    %c1_45 = arith.constant 1 : index
    %c0_46 = arith.constant 0 : index
    %c0_47 = arith.constant 0 : index
    %39 = vector.load %arg4[%c1_45, %c0_46, %c0_47] : memref<3x256x256xf32, #tpu.memory_space<vmem>>, vector<1x256x256xf32>
    %40 = vector.shape_cast %39 : vector<1x256x256xf32> to vector<256x256xf32>
    %cst_48 = arith.constant dense<0.000000e+00> : vector<16x256xf32>
    %41 = tpu.matmul %38, %40, %cst_48 {dimension_numbers = #tpu.dot_dimension_numbers<[1], [0], [0], [1], [0, 0, 1, 1], [], []>} : vector<16x256xf32>, vector<256x256xf32>, vector<16x256xf32> -> vector<16x256xf32>
    %42 = arith.addf %37, %41 : vector<16x256xf32>
    %c2_49 = arith.constant 2 : index
    %c0_50 = arith.constant 0 : index
    %43 = vector.load %arg8[%c2_49, %c0_50] : memref<18x256xf32, #tpu.memory_space<vmem>>, vector<16x256xf32>
    %c2_51 = arith.constant 2 : index
    %c0_52 = arith.constant 0 : index
    %c0_53 = arith.constant 0 : index
    %44 = vector.load %arg4[%c2_51, %c0_52, %c0_53] : memref<3x256x256xf32, #tpu.memory_space<vmem>>, vector<1x256x256xf32>
    %45 = vector.shape_cast %44 : vector<1x256x256xf32> to vector<256x256xf32>
    %cst_54 = arith.constant dense<0.000000e+00> : vector<16x256xf32>
    %46 = tpu.matmul %43, %45, %cst_54 {dimension_numbers = #tpu.dot_dimension_numbers<[1], [0], [0], [1], [0, 0, 1, 1], [], []>} : vector<16x256xf32>, vector<256x256xf32>, vector<16x256xf32> -> vector<16x256xf32>
    %47 = arith.addf %42, %46 : vector<16x256xf32>
    %48 = vector.broadcast %27 : vector<1x256xf32> to vector<16x256xf32>
    %49 = arith.addf %47, %48 : vector<16x256xf32>
    %cst_55 = arith.constant 0.000000e+00 : f32
    %50 = vector.broadcast %cst_55 : f32 to vector<16x256xf32>
    %51 = arith.maximumf %49, %50 : vector<16x256xf32>
    %c0_56 = arith.constant 0 : index
    %c0_57 = arith.constant 0 : index
    %c0_58 = arith.constant 0 : index
    %52 = vector.load %arg6[%c0_56, %c0_57, %c0_58] : memref<1x16x256xf32, #tpu.memory_space<vmem>>, vector<1x16x256xf32>
    %53 = vector.shape_cast %52 : vector<1x16x256xf32> to vector<16x256xf32>
    %54 = vector.shape_cast %51 : vector<16x256xf32> to vector<1x16x256xf32>
    tpu.vector_store %arg6[%c0_56, %c0_57, %c0_58], %54 {strides = array<i32>} : memref<1x16x256xf32, #tpu.memory_space<vmem>>, vector<1x16x256xf32>,
    return
  }
  func.func @transform_0(%arg0: i32) -> (i32, i32, i32) {
    %c0_i32 = arith.constant 0 : i32
    %c0_i32_0 = arith.constant 0 : i32
    %c0_i32_1 = arith.constant 0 : i32
    return %arg0, %c0_i32, %c0_i32_0 : i32, i32, i32
  }
  func.func @transform_1(%arg0: i32) -> (i32, i32, i32) {
    %c0_i32 = arith.constant 0 : i32
    %c0_i32_0 = arith.constant 0 : i32
    %c0_i32_1 = arith.constant 0 : i32
    %c0_i32_2 = arith.constant 0 : i32
    return %c0_i32, %c0_i32_0, %c0_i32_1 : i32, i32, i32
  }
  func.func @transform_2(%arg0: i32) -> (i32, i32) {
    %c0_i32 = arith.constant 0 : i32
    %c0_i32_0 = arith.constant 0 : i32
    %c0_i32_1 = arith.constant 0 : i32
    return %c0_i32, %c0_i32_0 : i32, i32
  }
  func.func @transform_3(%arg0: i32) -> (i32, i32, i32) {
    %c0_i32 = arith.constant 0 : i32
    %c0_i32_0 = arith.constant 0 : i32
    %c0_i32_1 = arith.constant 0 : i32
    %c0_i32_2 = arith.constant 0 : i32
    return %c0_i32, %c0_i32_0, %c0_i32_1 : i32, i32, i32
  }
  func.func @transform_4(%arg0: i32) -> (i32, i32) {
    %c0_i32 = arith.constant 0 : i32
    %c0_i32_0 = arith.constant 0 : i32
    %c0_i32_1 = arith.constant 0 : i32
    return %c0_i32, %c0_i32_0 : i32, i32
  }
  func.func @transform_5(%arg0: i32) -> (i32, i32, i32) {
    %c0_i32 = arith.constant 0 : i32
    %c0_i32_0 = arith.constant 0 : i32
    %c0_i32_1 = arith.constant 0 : i32
    return %arg0, %c0_i32, %c0_i32_0 : i32, i32, i32
  }
}

</mosaic_0001>

<bundles_post_ra>
// kernel: tile.13
= control target key start
LH: loop header
LB: loop body
LE: loop exit
PB: predicated region body
PF: predicated region fallthrough
CT: control target
= control target key end

     0   :  { %s28_s0 = inlined_call_operand.vmem [shape: f32[16], index: 0, kind: input, shape index: {}]   ;;  %s29_s1 = inlined_call_operand.vmem [shape: f32[16,16], index: 1, kind: output, shape index: {}]  }
   0x1   :  { %v4_v0 = vld [vmem:[%s28_s0] ss:$0 sm:$0xff] }
   0x2   :  { %5 = vst [vmem:[%s29_s1] sm:$0xff] %v4_v0  ;;  %8 = vst [vmem:[%s29_s1 + $0x8] sm:$0xff] %v4_v0 }

// kernel: tile.18
= control target key start
LH: loop header
LB: loop body
LE: loop exit
PB: predicated region body
PF: predicated region fallthrough
CT: control target
= control target key end

     0   :  { %s7_s6 = smov 3  ;;  %s21_s9 = smov 3  ;;  %vm4_vm0 = vcmask 130048   ;;  %vm11_vm1 = vcmask 1048448   ;;  %vm18_vm2 = vcmask 917248   ;;  %vm25_vm3 = vcmask 786048   ;;  %s128_s0 = inlined_call_operand.vmem [shape: f32[16,16], index: 0, kind: input, shape index: {}]   ;;  %s129_s1 = inlined_call_operand.vmem [shape: f32[1,256], index: 1, kind: output, shape index: {}]  }
   0x1   :  { %v66_v0 = vld [vmem:[%s128_s0 + $0x7] ss:$8 sm:%s7_s6]   ;;  %s81_s10 = smov 112   ;;  %v68_v1 = vld [vmem:[%s128_s0 + $0x5] ss:$8 sm:%s21_s9]   ;;  %s14_s13 = smov 3 }
   0x2   :  { %9 = vrot.lane.b32.xlu0 %v66_v0, %s81_s10  ;;  %s82_s14 = smov 80   ;;  %v67_v2 = vld [vmem:[%s128_s0 + $0x6] ss:$8 sm:%s14_s13]   ;;  %s28_s17 = smov 3  ;;  %vm32_vm4 = vcmask 654848   ;;  %vm39_vm5 = vcmask 523648  }
   0x3   :  { %23 = vrot.lane.b32.xlu1 %v68_v1, %s82_s14  ;;  %v69_v3 = vld [vmem:[%s128_s0 + $0x4] ss:$8 sm:%s28_s17]   ;;  %s35_s20 = smov 3  ;;  %s42_s21 = smov 3  ;;  %vm46_vm6 = vcmask 392448   ;;  %vm53_vm7 = vcmask 261248  }
   0x4   :  { %s83_s22 = smov 96   ;;  %s84_s23 = smov 64   ;;  %v70_v4 = vld [vmem:[%s128_s0 + $0x3] ss:$8 sm:%s35_s20]   ;;  %v71_v5 = vld [vmem:[%s128_s0 + $0x2] ss:$8 sm:%s42_s21]  }
   0x5   :  { %s2_s26 = smov 3  ;;  %s49_s29 = smov 3 }
   0x6   :  { %16 = vrot.lane.b32.xlu0 %v67_v2, %s83_s22  ;;  %v3_v6 = vld [vmem:[%s128_s0] ss:$8 sm:%s2_s26]   ;;  %s85_s3 = smov 48   ;;  %s86_s4 = smov 32  }
   0x7   :  { %30 = vrot.lane.b32.xlu1 %v69_v3, %s84_s23  ;;  %5 = vst.msk [vmem:[#allocation0] ss:$8 sm:$0x3] %vm4_vm0, %v3_v6   ;;  %v72_v7 = vld [vmem:[%s128_s0 + $0x1] ss:$8 sm:%s49_s29]   ;;  %s87_s0 = smov 16  }
   0xa   :  { %37 = vrot.lane.b32.xlu0 %v70_v4, %s85_s3 }
   0xb   :  { %44 = vrot.lane.b32.xlu1 %v71_v5, %s86_s4 }
   0xe   :  { %51 = vrot.lane.b32.xlu0 %v72_v7, %s87_s0 }
  0x74   :  { %v10_v8 = vpop.permute.xlu0 %9  }
  0x75   :  { %12 = vst.msk [vmem:[#allocation0] ss:$8 sm:$0x3] %vm11_vm1, %v10_v8   ;;  %v24_v9 = vpop.permute.xlu1 %23  }
  0x78   :  { %v17_v10 = vpop.permute.xlu0 %16  }
  0x79   :  { %19 = vst.msk [vmem:[#allocation0] ss:$8 sm:$0x3] %vm18_vm2, %v17_v10   ;;  %v31_v11 = vpop.permute.xlu1 %30  }
  0x7a   :  { %26 = vst.msk [vmem:[#allocation0] ss:$8 sm:$0x3] %vm25_vm3, %v24_v9  }
  0x7b   :  { %33 = vst.msk [vmem:[#allocation0] ss:$8 sm:$0x3] %vm32_vm4, %v31_v11  }
  0x7c   :  { %v38_v12 = vpop.permute.xlu0 %37  }
  0x7d   :  { %40 = vst.msk [vmem:[#allocation0] ss:$8 sm:$0x3] %vm39_vm5, %v38_v12   ;;  %v45_v13 = vpop.permute.xlu1 %44  }
  0x7e   :  { %47 = vst.msk [vmem:[#allocation0] ss:$8 sm:$0x3] %vm46_vm6, %v45_v13  }
  0x80   :  { %v52_v14 = vpop.permute.xlu0 %51  }
  0x81   :  { %54 = vst.msk [vmem:[#allocation0] ss:$8 sm:$0x3] %vm53_vm7, %v52_v14  }
  0x88   :  { %v58_v15 = vld [vmem:[#allocation0] sm:$0x1]  ;;  %v62_v16 = vld [vmem:[#allocation0 + $0x8] sm:$0x1] }
  0x89   :  { %60 = vst [vmem:[%s129_s1] sm:$0x1] %v58_v15  ;;  %73 = vst [vmem:[%s129_s1 + $0x1] sm:$0x1] %v62_v16 }

// kernel: neg.3
= control target key start
LH: loop header
LB: loop body
LE: loop exit
PB: predicated region body
PF: predicated region fallthrough
CT: control target
= control target key end

     0   :  { %2 = vsyncpa [#allocation1], 0  ;;  %s130_s6 = smov [#allocation0]   ;;  %s183_s0 = inlined_call_operand.hbm [shape: f32[3,3,8,8], index: 0, kind: input, shape index: {}]   ;;  %s184_s1 = inlined_call_operand.vmem [shape: bf16[3,3,8,8], index: 1, kind: output, shape index: {}]  }
   0x1   :  { %s6_s7 = sshll.u32 %s130_s6, 4  ;;  %s106_s10 = scalar_lea.hbm %s183_s0, 1152  ;;  %s7_s7 = int_to_ptr.vmem [resolvable:$true] %s6_s7 }
   0x2   :  { %p107_p0 = scmp.ne.s32.totalorder %s183_s0, %s106_s10  ;;  %p110_p1 = scmp.lt.u32.totalorder %s106_s10, %s183_s0 }
   0x4   :  { %p112_p2 = pnand %p110_p1, %p107_p0 }
   0x6   :  { %115 = shalt.err (!%p112_p2)
}
   0x7   :  { %s116_s15 = scalar_lea.vmem %s7_s7, 1152  ;;  %p121_p4 = scmp.lt.s32.totalorder %s7_s7, %s7_s7 }
   0x8   :  { %p117_p3 = scmp.ne.s32.totalorder %s7_s7, %s116_s15  ;;  %p122_p5 = scmp.lt.s32.totalorder %s116_s15, %s116_s15 }
   0xa   :  { %p123_p6 = por %p122_p5, %p121_p4 }
   0xc   :  { %p124_p7 = pnand %p123_p6, %p117_p3 }
   0xe   :  { %127 = shalt.err (!%p124_p7)
}
   0xf   :  { %s131_s16 = smov 128   ;;  %s132_s17 = smov 8  }
  0x10   :  { %12 = dma.hbm_to_vmem [thread:$0]  %s183_s0, 1152, %s7_s7, [#allocation1], %s131_s16, %s131_s16, %s132_s17  }
  0x11   :  { %128 = dma.done.wait [#allocation1], 1152  }
  0x12   :  { %129 = vsyncadd [#allocation1], 4294966144  ;;  %v14_v0 = vld [vmem:[#allocation0] sm:$0xff]  ;;  %v22_v1 = vld [vmem:[#allocation0 + $0x18] sm:$0xff]  ;;  %v133_v15 = vmov 0.0  }
  0x13   :  { %v31_v2 = vld [vmem:[#allocation0 + $0x30] sm:$0xff]  ;;  %v17_v3 = vxor.u32 2147483648, %v14_v0  ;;  %v25_v4 = vxor.u32 2147483648, %v22_v1  ;;  %v40_v6 = vld [vmem:[#allocation0 + $0x8] sm:$0xff]  ;;  %v49_v7 = vld [vmem:[#allocation0 + $0x20] sm:$0xff] }
  0x14   :  { %v34_v5 = vxor.u32 2147483648, %v31_v2  ;;  %v58_v8 = vld [vmem:[#allocation0 + $0x38] sm:$0xff]  ;;  %v43_v9 = vxor.u32 2147483648, %v40_v6  ;;  %v52_v10 = vxor.u32 2147483648, %v49_v7  ;;  %v67_v12 = vld [vmem:[#allocation0 + $0x10] sm:$0xff]  ;;  %v76_v13 = vld [vmem:[#allocation0 + $0x28] sm:$0xff] }
  0x15   :  { %v61_v11 = vxor.u32 2147483648, %v58_v8  ;;  %v85_v14 = vld [vmem:[#allocation0 + $0x40] sm:$0xff]  ;;  %v19_v16 = vpack.c.bf16 %v133_v15, %v17_v3  ;;  %v28_v17 = vpack.c.bf16 %v133_v15, %v25_v4  ;;  %v70_v19 = vxor.u32 2147483648, %v67_v12 }
  0x16   :  { %v37_v18 = vpack.c.bf16 %v133_v15, %v34_v5  ;;  %v46_v20 = vpack.c.bf16 %v133_v15, %v43_v9  ;;  %v55_v21 = vpack.c.bf16 %v133_v15, %v52_v10  ;;  %v79_v23 = vxor.u32 2147483648, %v76_v13 }
  0x17   :  { %v64_v22 = vpack.c.bf16 %v133_v15, %v61_v11  ;;  %20 = vst [vmem:[%s184_s1] sm:$0xf] %v19_v16  ;;  %94 = vst [vmem:[%s184_s1 + $0xc] sm:$0xf] %v28_v17  ;;  %v73_v24 = vpack.c.bf16 %v133_v15, %v70_v19  ;;  %v88_v25 = vxor.u32 2147483648, %v85_v14 }
  0x18   :  { %95 = vst [vmem:[%s184_s1 + $0x18] sm:$0xf] %v37_v18  ;;  %96 = vst [vmem:[%s184_s1 + $0x4] sm:$0xf] %v46_v20  ;;  %v82_v26 = vpack.c.bf16 %v133_v15, %v79_v23 }
  0x19   :  { %97 = vst [vmem:[%s184_s1 + $0x10] sm:$0xf] %v55_v21  ;;  %98 = vst [vmem:[%s184_s1 + $0x1c] sm:$0xf] %v64_v22  ;;  %v91_v27 = vpack.c.bf16 %v133_v15, %v88_v25 }
  0x1a   :  { %99 = vst [vmem:[%s184_s1 + $0x8] sm:$0xf] %v73_v24  ;;  %100 = vst [vmem:[%s184_s1 + $0x14] sm:$0xf] %v82_v26 }
  0x1b   :  { %101 = vst [vmem:[%s184_s1 + $0x20] sm:$0xf] %v91_v27 }
  0x1c   :  { %93 = vsyncpa [#allocation1], 1 }

// kernel: neg.2
= control target key start
LH: loop header
LB: loop body
LE: loop exit
PB: predicated region body
PF: predicated region fallthrough
CT: control target
= control target key end

     0   :  { %v98_v10 = vmov 0.0   ;;  %s163_s0 = inlined_call_operand.vmem [shape: f32[3,3,4,8], index: 0, kind: input, shape index: {}]   ;;  %s164_s1 = inlined_call_operand.vmem [shape: bf16[3,3,4,8], index: 1, kind: output, shape index: {}]  }
   0x1   :  { %v2_v0 = vld [vmem:[%s163_s0] sm:$0xf]  ;;  %v81_v1 = vld [vmem:[%s163_s0 + $0xc] sm:$0xf]  ;;  %v83_v2 = vld [vmem:[%s163_s0 + $0x18] sm:$0xf] }
   0x2   :  { %v5_v3 = vxor.u32 2147483648, %v2_v0  ;;  %v13_v4 = vxor.u32 2147483648, %v81_v1  ;;  %v22_v5 = vxor.u32 2147483648, %v83_v2  ;;  %v85_v6 = vld [vmem:[%s163_s0 + $0x4] sm:$0xf] }
   0x3   :  { %v31_v7 = vxor.u32 2147483648, %v85_v6  ;;  %v87_v8 = vld [vmem:[%s163_s0 + $0x10] sm:$0xf]  ;;  %v89_v9 = vld [vmem:[%s163_s0 + $0x1c] sm:$0xf] }
   0x4   :  { %v7_v11 = vpack.c.bf16 %v98_v10, %v5_v3  ;;  %v16_v12 = vpack.c.bf16 %v98_v10, %v13_v4  ;;  %v25_v13 = vpack.c.bf16 %v98_v10, %v22_v5  ;;  %v40_v14 = vxor.u32 2147483648, %v87_v8  ;;  %v91_v15 = vld [vmem:[%s163_s0 + $0x8] sm:$0xf]  ;;  %v93_v16 = vld [vmem:[%s163_s0 + $0x14] sm:$0xf] }
   0x5   :  { %v34_v17 = vpack.c.bf16 %v98_v10, %v31_v7  ;;  %v49_v18 = vxor.u32 2147483648, %v89_v9  ;;  %v58_v19 = vxor.u32 2147483648, %v91_v15  ;;  %v67_v20 = vxor.u32 2147483648, %v93_v16  ;;  %v95_v21 = vld [vmem:[%s163_s0 + $0x20] sm:$0xf] }
   0x6   :  { %8 = vst [vmem:[%s164_s1] sm:$0x3] %v7_v11  ;;  %82 = vst [vmem:[%s164_s1 + $0x6] sm:$0x3] %v16_v12  ;;  %v43_v22 = vpack.c.bf16 %v98_v10, %v40_v14  ;;  %v76_v23 = vxor.u32 2147483648, %v95_v21 }
   0x7   :  { %84 = vst [vmem:[%s164_s1 + $0xc] sm:$0x3] %v25_v13  ;;  %86 = vst [vmem:[%s164_s1 + $0x2] sm:$0x3] %v34_v17  ;;  %v52_v24 = vpack.c.bf16 %v98_v10, %v49_v18  ;;  %v61_v25 = vpack.c.bf16 %v98_v10, %v58_v19  ;;  %v70_v26 = vpack.c.bf16 %v98_v10, %v67_v20 }
   0x8   :  { %88 = vst [vmem:[%s164_s1 + $0x8] sm:$0x3] %v43_v22  ;;  %v79_v27 = vpack.c.bf16 %v98_v10, %v76_v23 }
   0x9   :  { %90 = vst [vmem:[%s164_s1 + $0xe] sm:$0x3] %v52_v24  ;;  %92 = vst [vmem:[%s164_s1 + $0x4] sm:$0x3] %v61_v25 }
   0xa   :  { %94 = vst [vmem:[%s164_s1 + $0xa] sm:$0x3] %v70_v26  ;;  %96 = vst [vmem:[%s164_s1 + $0x10] sm:$0x3] %v79_v27 }

// kernel: complex_conv_block.1
= control target key start
LH: loop header
LB: loop body
LE: loop exit
PB: predicated region body
PF: predicated region fallthrough
CT: control target
= control target key end

     0   :  { %s1739_s18 = smov 0   ;;  %s2686_s0 = inlined_call_operand.vmem [shape: f32[2,16,128], index: 0, kind: input, shape index: {}]   ;;  %s2687_s1 = inlined_call_operand.vmem [shape: f32[3,128,256], index: 1, kind: input, shape index: {}]   ;;  %s2688_s2 = inlined_call_operand.vmem [shape: f32[1,256], index: 2, kind: input, shape index: {}]   ;;  %s2689_s3 = inlined_call_operand.vmem [shape: f32[3,256,256], index: 3, kind: input, shape index: {}]   ;;  %s2690_s4 = inlined_call_operand.vmem [shape: f32[1,256], index: 4, kind: input, shape index: {}]   ;;  %s2691_s5 = inlined_call_operand.vmem [shape: f32[2,16,256], index: 5, kind: output, shape index: {}]  }
   0x1 LB: > { %s1182_s19 = sadd.s32 4294967295, %s1706_s18   ;;  %p1186_p0 = scmp.ge.s32.totalorder %s1706_s18, 1  ;;  %s1706_s18 = sphi %s1739_s18, %s15_s18  }
   0x2   : > { %p187_p1 = scmp.lt.s32.totalorder %s1706_s18, 3 }
   0x4   : > { %p188_p2 = pnand %p1186_p0, %p187_p1 }
   0x5   : > { %v1192_v0 = vld [vmem:[%s2687_s1 + $0x108] sm:$0xff] (!%p188_p2)  ;;  %v1194_v1 = vld [vmem:[%s2687_s1 + $0x118] sm:$0xff] (!%p188_p2)  ;;  %v1191_v2 = vld [vmem:[%s2687_s1 + $0x100] sm:$0xff] (!%p188_p2)  ;;  %p1756_p3 = scmp.lt.s32.totalorder (!%p188_p2), %s1182_s19, 1  ;;  %v1708_v7 = vmov (!%p188_p2), 0.0   ;;  %vm604_vm1 = vcmask (!%p188_p2), 1040384  }
   0x6   : > { %191 = sbr.rel (%p188_p2) target bundleno = 620 (0x26c), region = 40  ;;  %v1387_v3 = vpack.c.bf16 (!%p188_p2), %v1194_v1, %v1192_v0  ;;  %v1193_v4 = vld [vmem:[%s2687_s1 + $0x110] sm:$0xff] (!%p188_p2)  ;;  %v1196_v5 = vld [vmem:[%s2687_s1 + $0x128] sm:$0xff] (!%p188_p2)  ;;  %v1198_v6 = vld [vmem:[%s2687_s1 + $0x138] sm:$0xff] (!%p188_p2)  ;;  %365 = vmatprep.mubr.f32.mxu0 (!%p188_p2), %v1708_v7  ;;  %228 = vst [vmem:[#allocation2] sm:$0x1] (!%p188_p2), %v1708_v7 }
   0x7   : > { %229 = vst [vmem:[#allocation2 + $0x11] sm:$0x1] (!%p188_p2), %v1708_v7  ;;  %v1389_v8 = vpack.c.bf16 (!%p188_p2), %v1193_v4, %v1191_v2  ;;  %v1391_v9 = vpack.c.bf16 (!%p188_p2), %v1198_v6, %v1196_v5  ;;  %v1195_v10 = vld [vmem:[%s2687_s1 + $0x120] sm:$0xff] (!%p188_p2)  ;;  %v1197_v11 = vld [vmem:[%s2687_s1 + $0x130] sm:$0xff] (!%p188_p2)  ;;  %v1200_v12 = vld [vmem:[%s2687_s1 + $0x148] sm:$0xff] (!%p188_p2)  ;;  %vm766_vm2 = vcmask (!%p188_p2), 1046528  }
   0x8   : > { %1388 = vmatprep.subr.bf16.mxu0 (!%p188_p2), %v1387_v3  ;;  %v1202_v13 = vld [vmem:[%s2687_s1 + $0x158] sm:$0xff] (!%p188_p2)  ;;  %v1393_v14 = vpack.c.bf16 (!%p188_p2), %v1197_v11, %v1195_v10  ;;  %v1199_v16 = vld [vmem:[%s2687_s1 + $0x140] sm:$0xff] (!%p188_p2)  ;;  %v1201_v17 = vld [vmem:[%s2687_s1 + $0x150] sm:$0xff] (!%p188_p2)  ;;  %vm1008_vm3 = vcmask (!%p188_p2), 1045504  }
   0x9   : > { %1390 = vmatpush1.bf16.msra.mxu0 (!%p188_p2), %v1389_v8  ;;  %v1395_v15 = vpack.c.bf16 (!%p188_p2), %v1202_v13, %v1200_v12  ;;  %v1204_v18 = vld [vmem:[%s2687_s1 + $0x168] sm:$0xff] (!%p188_p2)  ;;  %v1206_v19 = vld [vmem:[%s2687_s1 + $0x178] sm:$0xff] (!%p188_p2)  ;;  %v1397_v20 = vpack.c.bf16 (!%p188_p2), %v1201_v17, %v1199_v16  ;;  %v1203_v22 = vld [vmem:[%s2687_s1 + $0x160] sm:$0xff] (!%p188_p2) }
   0xa   : > { %1392 = vmatprep.subr.bf16.mxu0 (!%p188_p2), %v1391_v9  ;;  %v1399_v21 = vpack.c.bf16 (!%p188_p2), %v1206_v19, %v1204_v18  ;;  %v1205_v23 = vld [vmem:[%s2687_s1 + $0x170] sm:$0xff] (!%p188_p2)  ;;  %v1208_v24 = vld [vmem:[%s2687_s1 + $0x188] sm:$0xff] (!%p188_p2)  ;;  %v1210_v25 = vld [vmem:[%s2687_s1 + $0x198] sm:$0xff] (!%p188_p2) }
   0xb   : > { %v1401_v27 = vpack.c.bf16 (!%p188_p2), %v1205_v23, %v1203_v22  ;;  %v1403_v28 = vpack.c.bf16 (!%p188_p2), %v1210_v25, %v1208_v24  ;;  %v1207_v29 = vld [vmem:[%s2687_s1 + $0x180] sm:$0xff] (!%p188_p2)  ;;  %v1209_v30 = vld [vmem:[%s2687_s1 + $0x190] sm:$0xff] (!%p188_p2)  ;;  %v1212_v31 = vld [vmem:[%s2687_s1 + $0x1a8] sm:$0xff] (!%p188_p2) }
   0xc   : > { %v1214_v32 = vld [vmem:[%s2687_s1 + $0x1b8] sm:$0xff] (!%p188_p2)  ;;  %v1405_v33 = vpack.c.bf16 (!%p188_p2), %v1209_v30, %v1207_v29  ;;  %v1211_v35 = vld [vmem:[%s2687_s1 + $0x1a0] sm:$0xff] (!%p188_p2)  ;;  %v1213_v36 = vld [vmem:[%s2687_s1 + $0x1b0] sm:$0xff] (!%p188_p2) }
   0xd   : > { %s2694_s19 = smov (!%p1756_p3, %s1182_s19), 1  ;;  %1394 = vmatpush1.bf16.msra.mxu0 %v1393_v14  ;;  %v1407_v34 = vpack.c.bf16 %v1214_v32, %v1212_v31  ;;  %v1216_v37 = vld [vmem:[%s2687_s1 + $0x1c8] sm:$0xff]  ;;  %v1218_v38 = vld [vmem:[%s2687_s1 + $0x1d8] sm:$0xff]  ;;  %v1409_v39 = vpack.c.bf16 %v1213_v36, %v1211_v35  ;;  %v1215_v41 = vld [vmem:[%s2687_s1 + $0x1c0] sm:$0xff] }
   0xe   : > { %s1385_s22 = sshll.u32 %s2694_s19, 4  ;;  %1396 = vmatprep.subr.bf16.mxu0 %v1395_v15  ;;  %v1411_v40 = vpack.c.bf16 %v1218_v38, %v1216_v37  ;;  %v1217_v42 = vld [vmem:[%s2687_s1 + $0x1d0] sm:$0xff]  ;;  %v1220_v44 = vld [vmem:[%s2687_s1 + $0x1e8] sm:$0xff]  ;;  %v1222_v45 = vld [vmem:[%s2687_s1 + $0x1f8] sm:$0xff]  ;;  %s1386_s6 = sshll.u32 %s2694_s19, 5 }
   0xf   : > { %s1804_s29 = scalar_lea.vmem %s2686_s0, %s1385_s22  ;;  %v1413_v46 = vpack.c.bf16 %v1217_v42, %v1215_v41  ;;  %v1415_v47 = vpack.c.bf16 %v1222_v45, %v1220_v44  ;;  %v1219_v48 = vld [vmem:[%s2687_s1 + $0x1e0] sm:$0xff]  ;;  %v1221_v49 = vld [vmem:[%s2687_s1 + $0x1f0] sm:$0xff]  ;;  %v235_v50 = vld [vmem:[%s2687_s1 + $0x8] sm:$0xff]  ;;  %s224_s9 = scalar_lea.vmem %s2691_s5, %s1386_s6 }
  0x10   : > { %v225_v26 = vld [vmem:[%s1804_s29] sm:$0xff]  ;;  %v226_v43 = vld [vmem:[%s1804_s29 + $0x8] sm:$0xff]  ;;  %v237_v51 = vld [vmem:[%s2687_s1 + $0x18] sm:$0xff]  ;;  %v1417_v52 = vpack.c.bf16 %v1221_v49, %v1219_v48 }
  0x11   : > { %1398 = vmatpush1.bf16.msra.mxu0 %v1397_v20  ;;  %230 = vst [vmem:[#allocation2 + $0x1] sm:$0xff] %v225_v26  ;;  %231 = vst [vmem:[#allocation2 + $0x9] sm:$0xff] %v226_v43  ;;  %v1419_v53 = vpack.c.bf16 %v237_v51, %v235_v50  ;;  %v234_v54 = vld [vmem:[%s2687_s1] sm:$0xff]  ;;  %v236_v55 = vld [vmem:[%s2687_s1 + $0x10] sm:$0xff] }
  0x12   : > { %1400 = vmatprep.subr.bf16.mxu0 %v1399_v21  ;;  %v239_v56 = vld [vmem:[%s2687_s1 + $0x28] sm:$0xff]  ;;  %v241_v57 = vld [vmem:[%s2687_s1 + $0x38] sm:$0xff]  ;;  %v1421_v58 = vpack.c.bf16 %v236_v55, %v234_v54  ;;  %v238_v59 = vld [vmem:[%s2687_s1 + $0x20] sm:$0xff] }
  0x13   : > { %v1423_v60 = vpack.c.bf16 %v241_v57, %v239_v56  ;;  %v240_v61 = vld [vmem:[%s2687_s1 + $0x30] sm:$0xff]  ;;  %v243_v62 = vld [vmem:[%s2687_s1 + $0x48] sm:$0xff]  ;;  %v245_v63 = vld [vmem:[%s2687_s1 + $0x58] sm:$0xff] }
  0x14   : > { %v628_v0 = vld [vmem:[%s2689_s3 + $0x8] sm:$0xff]  ;;  %v630_v1 = vld [vmem:[%s2689_s3 + $0x18] sm:$0xff]  ;;  %v627_v2 = vld [vmem:[%s2689_s3] sm:$0xff]  ;;  %v1425_v8 = vpack.c.bf16 %v240_v61, %v238_v59  ;;  %v1427_v14 = vpack.c.bf16 %v245_v63, %v243_v62 }
  0x15   : > { %1402 = vmatpush1.bf16.msra.mxu0 %v1401_v27  ;;  %v1547_v3 = vpack.c.bf16 %v630_v1, %v628_v0  ;;  %v629_v4 = vld [vmem:[%s2689_s3 + $0x10] sm:$0xff]  ;;  %v632_v5 = vld [vmem:[%s2689_s3 + $0x28] sm:$0xff]  ;;  %v634_v6 = vld [vmem:[%s2689_s3 + $0x38] sm:$0xff] }
  0x16   : > { %1404 = vmatprep.subr.bf16.mxu0 %v1403_v28  ;;  %v1549_v9 = vpack.c.bf16 %v629_v4, %v627_v2  ;;  %v1551_v10 = vpack.c.bf16 %v634_v6, %v632_v5  ;;  %v631_v11 = vld [vmem:[%s2689_s3 + $0x20] sm:$0xff]  ;;  %v633_v12 = vld [vmem:[%s2689_s3 + $0x30] sm:$0xff]  ;;  %v636_v13 = vld [vmem:[%s2689_s3 + $0x48] sm:$0xff] }
  0x17   : > { %v242_v15 = vld [vmem:[%s2687_s1 + $0x40] sm:$0xff]  ;;  %v244_v16 = vld [vmem:[%s2687_s1 + $0x50] sm:$0xff]  ;;  %1548 = vmatprep.subr.bf16.mxu1 %v1547_v3  ;;  %v638_v17 = vld [vmem:[%s2689_s3 + $0x58] sm:$0xff]  ;;  %v1553_v20 = vpack.c.bf16 %v633_v12, %v631_v11 }
  0x18   : > { %v247_v18 = vld [vmem:[%s2687_s1 + $0x68] sm:$0xff]  ;;  %v249_v19 = vld [vmem:[%s2687_s1 + $0x78] sm:$0xff]  ;;  %1550 = vmatpush1.bf16.msra.mxu1 %v1549_v9  ;;  %v1555_v21 = vpack.c.bf16 %v638_v17, %v636_v13  ;;  %v635_v22 = vld [vmem:[%s2689_s3 + $0x40] sm:$0xff]  ;;  %v1429_v24 = vpack.c.bf16 %v244_v16, %v242_v15 }
  0x19   : > { %1406 = vmatpush1.bf16.msra.mxu0 %v1405_v33  ;;  %1552 = vmatprep.subr.bf16.mxu1 %v1551_v10  ;;  %v637_v23 = vld [vmem:[%s2689_s3 + $0x50] sm:$0xff]  ;;  %v640_v25 = vld [vmem:[%s2689_s3 + $0x68] sm:$0xff]  ;;  %v1431_v27 = vpack.c.bf16 %v249_v19, %v247_v18  ;;  %v246_v28 = vld [vmem:[%s2687_s1 + $0x60] sm:$0xff] }
  0x1a   : > { %1408 = vmatprep.subr.bf16.mxu0 %v1407_v34  ;;  %v248_v29 = vld [vmem:[%s2687_s1 + $0x70] sm:$0xff]  ;;  %v251_v30 = vld [vmem:[%s2687_s1 + $0x88] sm:$0xff]  ;;  %v253_v31 = vld [vmem:[%s2687_s1 + $0x98] sm:$0xff]  ;;  %v1557_v32 = vpack.c.bf16 %v637_v23, %v635_v22 }
  0x1b   : > { %v639_v34 = vld [vmem:[%s2689_s3 + $0x60] sm:$0xff]  ;;  %v641_v35 = vld [vmem:[%s2689_s3 + $0x70] sm:$0xff]  ;;  %v1433_v36 = vpack.c.bf16 %v248_v29, %v246_v28  ;;  %v644_v37 = vld [vmem:[%s2689_s3 + $0x88] sm:$0xff] }
  0x1c   : > { %1554 = vmatpush1.bf16.msra.mxu1 %v1553_v20  ;;  %v646_v38 = vld [vmem:[%s2689_s3 + $0x98] sm:$0xff]  ;;  %v252_v41 = vld [vmem:[%s2687_s1 + $0x90] sm:$0xff]  ;;  %v255_v42 = vld [vmem:[%s2687_s1 + $0xa8] sm:$0xff]  ;;  %v1561_v44 = vpack.c.bf16 %v641_v35, %v639_v34 }
  0x1d   : > { %1410 = vmatpush1.bf16.msra.mxu0 %v1409_v39  ;;  %1556 = vmatprep.subr.bf16.mxu1 %v1555_v21  ;;  %v1435_v39 = vpack.c.bf16 %v253_v31, %v251_v30  ;;  %v1563_v45 = vpack.c.bf16 %v646_v38, %v644_v37  ;;  %v648_v49 = vld [vmem:[%s2689_s3 + $0xa8] sm:$0xff]  ;;  %v650_v50 = vld [vmem:[%s2689_s3 + $0xb8] sm:$0xff]  ;;  %v649_v59 = vld [vmem:[%s2689_s3 + $0xb0] sm:$0xff] }
  0x1e   : > { %1412 = vmatprep.subr.bf16.mxu0 %v1411_v40  ;;  %v250_v40 = vld [vmem:[%s2687_s1 + $0x80] sm:$0xff]  ;;  %v259_v54 = vld [vmem:[%s2687_s1 + $0xc8] sm:$0xff]  ;;  %v261_v55 = vld [vmem:[%s2687_s1 + $0xd8] sm:$0xff]  ;;  %v1567_v57 = vpack.c.bf16 %v650_v50, %v648_v49 }
  0x1f   : > { %v1437_v48 = vpack.c.bf16 %v252_v41, %v250_v40  ;;  %v652_v61 = vld [vmem:[%s2689_s3 + $0xc8] sm:$0xff]  ;;  %v654_v62 = vld [vmem:[%s2689_s3 + $0xd8] sm:$0xff]  ;;  %v1443_v63 = vpack.c.bf16 %v261_v55, %v259_v54  ;;  %v258_v0 = vld [vmem:[%s2687_s1 + $0xc0] sm:$0xff] }
  0x20   : > { %1558 = vmatpush1.bf16.msra.mxu1 %v1557_v32  ;;  %v260_v1 = vld [vmem:[%s2687_s1 + $0xd0] sm:$0xff]  ;;  %v263_v2 = vld [vmem:[%s2687_s1 + $0xe8] sm:$0xff]  ;;  %v265_v3 = vld [vmem:[%s2687_s1 + $0xf8] sm:$0xff]  ;;  %v1571_v5 = vpack.c.bf16 %v654_v62, %v652_v61 }
  0x21   : > { %1414 = vmatpush1.bf16.msra.mxu0 %v1413_v46  ;;  %v643_v46 = vld [vmem:[%s2689_s3 + $0x80] sm:$0xff]  ;;  %v1445_v9 = vpack.c.bf16 %v260_v1, %v258_v0  ;;  %v656_v10 = vld [vmem:[%s2689_s3 + $0xe8] sm:$0xff]  ;;  %v658_v11 = vld [vmem:[%s2689_s3 + $0xf8] sm:$0xff]  ;;  %v1447_v12 = vpack.c.bf16 %v265_v3, %v263_v2 }
  0x22   : > { %1416 = vmatprep.subr.bf16.mxu0 %v1415_v47  ;;  %v645_v47 = vld [vmem:[%s2689_s3 + $0x90] sm:$0xff]  ;;  %v651_v6 = vld [vmem:[%s2689_s3 + $0xc0] sm:$0xff]  ;;  %v1224_v15 = vld [vmem:[%s2687_s1 + $0x208] sm:$0xff]  ;;  %v1575_v18 = vpack.c.bf16 %v658_v11, %v656_v10 }
  0x23   : > { %v1565_v56 = vpack.c.bf16 %v645_v47, %v643_v46  ;;  %v262_v13 = vld [vmem:[%s2687_s1 + $0xe0] sm:$0xff]  ;;  %v1226_v16 = vld [vmem:[%s2687_s1 + $0x218] sm:$0xff]  ;;  %v657_v20 = vld [vmem:[%s2689_s3 + $0xf0] sm:$0xff] }
  0x24   : > { %v655_v19 = vld [vmem:[%s2689_s3 + $0xe0] sm:$0xff]  ;;  %v660_v22 = vld [vmem:[%s2689_s3 + $0x108] sm:$0xff]  ;;  %v662_v23 = vld [vmem:[%s2689_s3 + $0x118] sm:$0xff] }
  0x25   : > { %1418 = vmatpush1.bf16.msra.mxu0 %v1417_v52  ;;  %v254_v52 = vld [vmem:[%s2687_s1 + $0xa0] sm:$0xff]  ;;  %v1230_v28 = vld [vmem:[%s2687_s1 + $0x238] sm:$0xff]  ;;  %v1577_v29 = vpack.c.bf16 %v657_v20, %v655_v19  ;;  %v1579_v30 = vpack.c.bf16 %v662_v23, %v660_v22  ;;  %v661_v32 = vld [vmem:[%s2689_s3 + $0x110] sm:$0xff] }
  0x26   : > { %1420 = vmatprep.subr.bf16.mxu0 %v1419_v53  ;;  %v256_v53 = vld [vmem:[%s2687_s1 + $0xb0] sm:$0xff]  ;;  %v659_v31 = vld [vmem:[%s2689_s3 + $0x100] sm:$0xff]  ;;  %v664_v35 = vld [vmem:[%s2689_s3 + $0x128] sm:$0xff] }
  0x27   : > { %v1227_v38 = vld [vmem:[%s2687_s1 + $0x220] sm:$0xff]  ;;  %v1232_v40 = vld [vmem:[%s2687_s1 + $0x248] sm:$0xff]  ;;  %v1234_v41 = vld [vmem:[%s2687_s1 + $0x258] sm:$0xff] }
  0x28   : > { %366 = vmatmul.mubr.f32.vlgmr.msra.gmra.mrb[0].mxu0 %v225_v26  ;;  %v642_v26 = vld [vmem:[%s2689_s3 + $0x78] sm:$0xff]  ;;  %v233_v47 = vld [vmem:[#allocation2 + $0x8] sm:$0xff]  ;;  %v1459_v50 = vpack.c.bf16 %v1234_v41, %v1232_v40  ;;  %v1237_v0 = vld [vmem:[%s2687_s1 + $0x270] sm:$0xff] }
  0x29   : > { %1422 = vmatpush1.bf16.msra.mxu0 %v1421_v58  ;;  %371 = vmatprep.mubr.f32.mxu0 %v1708_v7  ;;  %v1559_v33 = vpack.c.bf16 %v642_v26, %v640_v25  ;;  %v647_v58 = vld [vmem:[%s2689_s3 + $0xa0] sm:$0xff]  ;;  %v1225_v26 = vld [vmem:[%s2687_s1 + $0x210] sm:$0xff]  ;;  %v670_v49 = vld [vmem:[%s2689_s3 + $0x158] sm:$0xff] }
  0x2a   : > { %1424 = vmatprep.subr.bf16.mxu0 %v1423_v60  ;;  %v1441_v60 = vpack.c.bf16 %v256_v53, %v254_v52  ;;  %v1569_v4 = vpack.c.bf16 %v649_v59, %v647_v58  ;;  %v1223_v25 = vld [vmem:[%s2687_s1 + $0x200] sm:$0xff]  ;;  %v1233_v52 = vld [vmem:[%s2687_s1 + $0x250] sm:$0xff]  ;;  %v1236_v53 = vld [vmem:[%s2687_s1 + $0x268] sm:$0xff] }
  0x2b   : > { %1560 = vmatprep.subr.bf16.mxu1 %v1559_v33  ;;  %v232_v33 = vld [vmem:[#allocation2] sm:$0xff]  ;;  %v1453_v34 = vpack.c.bf16 %v1225_v26, %v1223_v25  ;;  %v1238_v54 = vld [vmem:[%s2687_s1 + $0x278] sm:$0xff]  ;;  %v669_v58 = vld [vmem:[%s2689_s3 + $0x150] sm:$0xff] }
  0x2c   : > { %372 = vmatmul.mubr.f32.gmra.mrb[2].mxu0 %v226_v43  ;;  %v257_v43 = vld [vmem:[%s2687_s1 + $0xb8] sm:$0xff]  ;;  %1562 = vmatpush1.bf16.msra.mxu1 %v1561_v44  ;;  %v663_v44 = vld [vmem:[%s2689_s3 + $0x120] sm:$0xff]  ;;  %v1463_v62 = vpack.c.bf16 %v1238_v54, %v1236_v53  ;;  %v1240_v1 = vld [vmem:[%s2687_s1 + $0x288] sm:$0xff] }
  0x2d   : > { %1426 = vmatpush1.bf16.msra.mxu0 %v1425_v8  ;;  %442 = vmatprep.mubr.f32.mxu0 %v1708_v7  ;;  %v1439_v51 = vpack.c.bf16 %v257_v43, %v255_v42  ;;  %v653_v8 = vld [vmem:[%s2689_s3 + $0xd0] sm:$0xff]  ;;  %v1581_v42 = vpack.c.bf16 %v661_v32, %v659_v31  ;;  %v674_v61 = vld [vmem:[%s2689_s3 + $0x178] sm:$0xff]  ;;  %v1239_v10 = vld [vmem:[%s2687_s1 + $0x280] sm:$0xff] }
  0x2e   : > { %1428 = vmatprep.subr.bf16.mxu0 %v1427_v14  ;;  %1564 = vmatprep.subr.bf16.mxu1 %v1563_v45  ;;  %v264_v14 = vld [vmem:[%s2687_s1 + $0xf0] sm:$0xff]  ;;  %v1573_v17 = vpack.c.bf16 %v653_v8, %v651_v6  ;;  %v1242_v2 = vld [vmem:[%s2687_s1 + $0x298] sm:$0xff]  ;;  %v1248_v19 = vld [vmem:[%s2687_s1 + $0x2c8] sm:$0xff] }
  0x2f   : > { %v1449_v21 = vpack.c.bf16 %v264_v14, %v262_v13  ;;  %v665_v45 = vld [vmem:[%s2689_s3 + $0x130] sm:$0xff]  ;;  %v1246_v13 = vld [vmem:[%s2687_s1 + $0x2b8] sm:$0xff]  ;;  %v1247_v23 = vld [vmem:[%s2687_s1 + $0x2c0] sm:$0xff] }
  0x30   : > { %1566 = vmatpush1.bf16.msra.mxu1 %v1565_v56  ;;  %v1585_v55 = vpack.c.bf16 %v665_v45, %v663_v44  ;;  %v673_v6 = vld [vmem:[%s2689_s3 + $0x170] sm:$0xff]  ;;  %v1250_v20 = vld [vmem:[%s2687_s1 + $0x2d8] sm:$0xff]  ;;  %v1252_v25 = vld [vmem:[%s2687_s1 + $0x2e8] sm:$0xff] }
  0x31   : > { %1430 = vmatpush1.bf16.msra.mxu0 %v1429_v24  ;;  %1568 = vmatprep.subr.bf16.mxu1 %v1567_v57  ;;  %v1451_v24 = vpack.c.bf16 %v1226_v16, %v1224_v15  ;;  %v667_v57 = vld [vmem:[%s2689_s3 + $0x140] sm:$0xff]  ;;  %v1241_v11 = vld [vmem:[%s2687_s1 + $0x290] sm:$0xff]  ;;  %v1475_v22 = vpack.c.bf16 %v1250_v20, %v1248_v19  ;;  %v1254_v26 = vld [vmem:[%s2687_s1 + $0x2f8] sm:$0xff] }
  0x32   : > { %1432 = vmatprep.subr.bf16.mxu0 %v1431_v27  ;;  %v1228_v27 = vld [vmem:[%s2687_s1 + $0x228] sm:$0xff]  ;;  %v1589_v3 = vpack.c.bf16 %v669_v58, %v667_v57  ;;  %v1469_v15 = vpack.c.bf16 %v1241_v11, %v1239_v10  ;;  %v1258_v32 = vld [vmem:[%s2689_s3 + $0x218] sm:$0xff]  ;;  %v1279_v10 = vld [vmem:[%s2689_s3 + $0x2c0] sm:$0xff] }
  0x33   : > { %v1455_v37 = vpack.c.bf16 %v1230_v28, %v1228_v27  ;;  %v1479_v28 = vpack.c.bf16 %v1254_v26, %v1252_v25  ;;  %v1256_v31 = vld [vmem:[%s2689_s3 + $0x208] sm:$0xff]  ;;  %v1266_v45 = vld [vmem:[%s2689_s3 + $0x258] sm:$0xff]  ;;  %v1281_v11 = vld [vmem:[%s2689_s3 + $0x2d0] sm:$0xff] }
  0x34   : > { %1570 = vmatpush1.bf16.msra.mxu1 %v1569_v4  ;;  %v1264_v44 = vld [vmem:[%s2689_s3 + $0x248] sm:$0xff]  ;;  %v1274_v58 = vld [vmem:[%s2689_s3 + $0x298] sm:$0xff] }
  0x35   : > { %1434 = vmatpush1.bf16.msra.mxu0 %v1433_v36  ;;  %1572 = vmatprep.subr.bf16.mxu1 %v1571_v5  ;;  %v666_v36 = vld [vmem:[%s2689_s3 + $0x138] sm:$0xff]  ;;  %v671_v5 = vld [vmem:[%s2689_s3 + $0x160] sm:$0xff]  ;;  %v1272_v57 = vld [vmem:[%s2689_s3 + $0x288] sm:$0xff] }
  0x36   : > { %1436 = vmatprep.subr.bf16.mxu0 %v1435_v39  ;;  %v1229_v39 = vld [vmem:[%s2687_s1 + $0x230] sm:$0xff]  ;;  %v1583_v43 = vpack.c.bf16 %v666_v36, %v664_v35  ;;  %v1593_v14 = vpack.c.bf16 %v673_v6, %v671_v5  ;;  %v1255_v35 = vld [vmem:[%s2689_s3 + $0x200] sm:$0xff]  ;;  %v1280_v5 = vld [vmem:[%s2689_s3 + $0x2c8] sm:$0xff] }
  0x37   : > { %v1457_v46 = vpack.c.bf16 %v1229_v39, %v1227_v38  ;;  %v1257_v36 = vld [vmem:[%s2689_s3 + $0x210] sm:$0xff]  ;;  %v1262_v38 = vld [vmem:[%s2689_s3 + $0x238] sm:$0xff]  ;;  %v455_v39 = vld [vmem:[#allocation2 + $0x2] sm:$0xff] }
  0x38   : > { %1574 = vmatpush1.bf16.msra.mxu1 %v1573_v17  ;;  %v1243_v17 = vld [vmem:[%s2687_s1 + $0x2a0] sm:$0xff]  ;;  %v1485_v40 = vpack.c.bf16 %v1257_v36, %v1255_v35  ;;  %v1282_v6 = vld [vmem:[%s2689_s3 + $0x2d8] sm:$0xff]  ;;  %v1297_v35 = vld [vmem:[%s2689_s3 + $0x350] sm:$0xff] }
  0x39   : > { %1438 = vmatpush1.bf16.msra.mxu0 %v1437_v48  ;;  %1576 = vmatprep.subr.bf16.mxu1 %v1575_v18  ;;  %v668_v48 = vld [vmem:[%s2689_s3 + $0x148] sm:$0xff]  ;;  %v1245_v18 = vld [vmem:[%s2687_s1 + $0x2b0] sm:$0xff]  ;;  %v1290_v19 = vld [vmem:[%s2689_s3 + $0x318] sm:$0xff] }
  0x3a   : > { %1440 = vmatprep.subr.bf16.mxu0 %v1439_v51  ;;  %v1231_v51 = vld [vmem:[%s2687_s1 + $0x240] sm:$0xff]  ;;  %v1587_v56 = vpack.c.bf16 %v670_v49, %v668_v48  ;;  %v1491_v48 = vpack.c.bf16 %v1266_v45, %v1264_v44  ;;  %v1294_v25 = vld [vmem:[%s2689_s3 + $0x338] sm:$0xff] }
  0x3b   : > { %v1461_v59 = vpack.c.bf16 %v1233_v52, %v1231_v51  ;;  %v1263_v49 = vld [vmem:[%s2689_s3 + $0x240] sm:$0xff]  ;;  %v1268_v51 = vld [vmem:[%s2689_s3 + $0x268] sm:$0xff]  ;;  %v1270_v52 = vld [vmem:[%s2689_s3 + $0x278] sm:$0xff] }
  0x3c   : > { %1578 = vmatpush1.bf16.msra.mxu1 %v1577_v29  ;;  %v1251_v29 = vld [vmem:[%s2687_s1 + $0x2e0] sm:$0xff]  ;;  %v1495_v54 = vpack.c.bf16 %v1270_v52, %v1268_v51  ;;  %v682_v51 = vld [vmem:[%s2689_s3 + $0x1b8] sm:$0xff]  ;;  %v1304_v52 = vld [vmem:[%s2689_s3 + $0x388] sm:$0xff] }
  0x3d   : > { %1442 = vmatpush1.bf16.msra.mxu0 %v1441_v60  ;;  %1580 = vmatprep.subr.bf16.mxu1 %v1579_v30  ;;  %v672_v60 = vld [vmem:[%s2689_s3 + $0x168] sm:$0xff]  ;;  %v1253_v30 = vld [vmem:[%s2687_s1 + $0x2f0] sm:$0xff] }
  0x3e   : > { %1444 = vmatprep.subr.bf16.mxu0 %v1443_v63  ;;  %v1235_v63 = vld [vmem:[%s2687_s1 + $0x260] sm:$0xff]  ;;  %v1591_v4 = vpack.c.bf16 %v674_v61, %v672_v60  ;;  %v1499_v60 = vpack.c.bf16 %v1274_v58, %v1272_v57 }
  0x3f   : > { %v1465_v8 = vpack.c.bf16 %v1237_v0, %v1235_v63  ;;  %v1271_v61 = vld [vmem:[%s2689_s3 + $0x280] sm:$0xff]  ;;  %v1276_v63 = vld [vmem:[%s2689_s3 + $0x2a8] sm:$0xff]  ;;  %v1278_v0 = vld [vmem:[%s2689_s3 + $0x2b8] sm:$0xff] }
  0x40   : > { %1582 = vmatpush1.bf16.msra.mxu1 %v1581_v42  ;;  %v1259_v42 = vld [vmem:[%s2689_s3 + $0x220] sm:$0xff] }
  0x41   : > { %1446 = vmatpush1.bf16.msra.mxu0 %v1445_v9  ;;  %1584 = vmatprep.subr.bf16.mxu1 %v1583_v43  ;;  %v1467_v9 = vpack.c.bf16 %v1242_v2, %v1240_v1  ;;  %v1261_v43 = vld [vmem:[%s2689_s3 + $0x230] sm:$0xff]  ;;  %v1503_v2 = vpack.c.bf16 %v1278_v0, %v1276_v63  ;;  %v686_v63 = vld [vmem:[%s2689_s3 + $0x1d8] sm:$0xff]  ;;  %v1308_v0 = vld [vmem:[%s2689_s3 + $0x3a8] sm:$0xff] }
  0x42   : > { %1448 = vmatprep.subr.bf16.mxu0 %v1447_v12  ;;  %v1244_v12 = vld [vmem:[%s2687_s1 + $0x2a8] sm:$0xff] }
  0x43   : > { %v1471_v16 = vpack.c.bf16 %v1246_v13, %v1244_v12  ;;  %v1284_v12 = vld [vmem:[%s2689_s3 + $0x2e8] sm:$0xff]  ;;  %v1286_v13 = vld [vmem:[%s2689_s3 + $0x2f8] sm:$0xff] }
  0x44   : > { %1586 = vmatpush1.bf16.msra.mxu1 %v1585_v55  ;;  %v1267_v55 = vld [vmem:[%s2689_s3 + $0x260] sm:$0xff] }
  0x45   : > { %1450 = vmatpush1.bf16.msra.mxu0 %v1449_v21  ;;  %1588 = vmatprep.subr.bf16.mxu1 %v1587_v56  ;;  %v1473_v21 = vpack.c.bf16 %v1245_v18, %v1243_v17  ;;  %v1269_v56 = vld [vmem:[%s2689_s3 + $0x270] sm:$0xff]  ;;  %v1288_v18 = vld [vmem:[%s2689_s3 + $0x308] sm:$0xff] }
  0x46   : > { %1452 = vmatprep.subr.bf16.mxu0 %v1451_v24  ;;  %v1249_v24 = vld [vmem:[%s2687_s1 + $0x2d0] sm:$0xff] }
  0x47   : > { %v1477_v27 = vpack.c.bf16 %v1249_v24, %v1247_v23  ;;  %v1285_v17 = vld [vmem:[%s2689_s3 + $0x2f0] sm:$0xff]  ;;  %v1292_v24 = vld [vmem:[%s2689_s3 + $0x328] sm:$0xff] }
  0x48   : > { %443 = vmatmul.mubr.f32.vlgmr.msra.gmra.mrb[0].mxu0 %v232_v33  ;;  %1590 = vmatpush1.bf16.msra.mxu1 %v1589_v3  ;;  %v1481_v33 = vpack.c.bf16 %v1253_v30, %v1251_v29  ;;  %v1275_v3 = vld [vmem:[%s2689_s3 + $0x2a0] sm:$0xff]  ;;  %v1289_v23 = vld [vmem:[%s2689_s3 + $0x310] sm:$0xff] }
  0x49   : > { %1454 = vmatpush1.bf16.msra.mxu0 %v1453_v34  ;;  %448 = vmatprep.mubr.f32.mxu0 %v1708_v7  ;;  %v1483_v34 = vpack.c.bf16 %v1258_v32, %v1256_v31  ;;  %v1293_v29 = vld [vmem:[%s2689_s3 + $0x330] sm:$0xff]  ;;  %v1296_v31 = vld [vmem:[%s2689_s3 + $0x348] sm:$0xff]  ;;  %v1298_v32 = vld [vmem:[%s2689_s3 + $0x358] sm:$0xff] }
  0x4a   : > { %1456 = vmatprep.subr.bf16.mxu0 %v1455_v37  ;;  %1592 = vmatprep.subr.bf16.mxu1 %v1591_v4  ;;  %v1260_v37 = vld [vmem:[%s2689_s3 + $0x228] sm:$0xff]  ;;  %v1277_v4 = vld [vmem:[%s2689_s3 + $0x2b0] sm:$0xff] }
  0x4b   : > { %v1487_v41 = vpack.c.bf16 %v1262_v38, %v1260_v37  ;;  %v676_v37 = vld [vmem:[%s2689_s3 + $0x188] sm:$0xff]  ;;  %v678_v38 = vld [vmem:[%s2689_s3 + $0x198] sm:$0xff] }
  0x4c   : > { %449 = vmatmul.mubr.f32.gmra.mrb[2].mxu0 %v233_v47  ;;  %1594 = vmatpush1.bf16.msra.mxu1 %v1593_v14  ;;  %v1489_v47 = vpack.c.bf16 %v1261_v43, %v1259_v42  ;;  %v1509_v14 = vpack.c.bf16 %v1281_v11, %v1279_v10  ;;  %v677_v42 = vld [vmem:[%s2689_s3 + $0x190] sm:$0xff]  ;;  %v1302_v43 = vld [vmem:[%s2689_s3 + $0x378] sm:$0xff]  ;;  %v688_v10 = vld [vmem:[%s2689_s3 + $0x1e8] sm:$0xff] }
  0x4d   : > { %1458 = vmatpush1.bf16.msra.mxu0 %v1457_v46  ;;  %554 = vmatprep.mubr.f32.mxu0 %v1708_v7  ;;  %v456_v46 = vld [vmem:[#allocation2 + $0xa] sm:$0xff]  ;;  %v690_v11 = vld [vmem:[%s2689_s3 + $0x1f8] sm:$0xff] }
  0x4e   : > { %1460 = vmatprep.subr.bf16.mxu0 %v1459_v50  ;;  %v1265_v50 = vld [vmem:[%s2689_s3 + $0x250] sm:$0xff] }
  0x4f   : > { %v1493_v53 = vpack.c.bf16 %v1265_v50, %v1263_v49  ;;  %v572_v49 = vlaneseq  ;;  %v680_v50 = vld [vmem:[%s2689_s3 + $0x1a8] sm:$0xff] }
  0x51   : > { %1462 = vmatpush1.bf16.msra.mxu0 %v1461_v59  ;;  %v1497_v59 = vpack.c.bf16 %v1269_v56, %v1267_v55  ;;  %v681_v55 = vld [vmem:[%s2689_s3 + $0x1b0] sm:$0xff]  ;;  %v1306_v56 = vld [vmem:[%s2689_s3 + $0x398] sm:$0xff]  ;;  %vm593_vm0 = vcmp.lt.s32.totalorder %v572_v49, 256 }
  0x52   : > { %1464 = vmatprep.subr.bf16.mxu0 %v1463_v62  ;;  %v1273_v62 = vld [vmem:[%s2689_s3 + $0x290] sm:$0xff]  ;;  %v1531_v58 = vpack.c.bf16 %v1306_v56, %v1304_v52  ;;  %595 = vst.msk [vmem:[#allocation3] ss:$8 sm:$0x3] %vm593_vm0, %v1708_v7 }
  0x53   : > { %v1501_v1 = vpack.c.bf16 %v1273_v62, %v1271_v61  ;;  %598 = vst.msk [vmem:[#allocation3 + $0x21] ss:$8 sm:$0x3] %vm593_vm0, %v1708_v7  ;;  %v684_v62 = vld [vmem:[%s2689_s3 + $0x1c8] sm:$0xff] }
  0x55   : > { %1466 = vmatpush1.bf16.msra.mxu0 %v1465_v8  ;;  %v1505_v8 = vpack.c.bf16 %v1277_v4, %v1275_v3  ;;  %v1310_v3 = vld [vmem:[%s2689_s3 + $0x3b8] sm:$0xff] }
  0x56   : > { %1468 = vmatprep.subr.bf16.mxu0 %v1467_v9  ;;  %v1507_v9 = vpack.c.bf16 %v1282_v6, %v1280_v5  ;;  %v1535_v5 = vpack.c.bf16 %v1310_v3, %v1308_v0  ;;  %v1307_v6 = vld [vmem:[%s2689_s3 + $0x3a0] sm:$0xff] }
  0x59   : > { %1470 = vmatpush1.bf16.msra.mxu0 %v1469_v15  ;;  %v1511_v15 = vpack.c.bf16 %v1286_v13, %v1284_v12  ;;  %v1312_v12 = vld [vmem:[%s2689_s3 + $0x3c8] sm:$0xff]  ;;  %v1607_v13 = vpack.c.bf16 %v690_v11, %v688_v10 }
  0x5a   : > { %1472 = vmatprep.subr.bf16.mxu0 %v1471_v16  ;;  %v1283_v16 = vld [vmem:[%s2689_s3 + $0x2e0] sm:$0xff] }
  0x5b   : > { %v1513_v20 = vpack.c.bf16 %v1285_v17, %v1283_v16  ;;  %v1314_v16 = vld [vmem:[%s2689_s3 + $0x3d8] sm:$0xff] }
  0x5d   : > { %1474 = vmatpush1.bf16.msra.mxu0 %v1473_v21  ;;  %v1515_v21 = vpack.c.bf16 %v1290_v19, %v1288_v18  ;;  %v1539_v18 = vpack.c.bf16 %v1314_v16, %v1312_v12  ;;  %v1311_v19 = vld [vmem:[%s2689_s3 + $0x3c0] sm:$0xff] }
  0x5e   : > { %1476 = vmatprep.subr.bf16.mxu0 %v1475_v22  ;;  %v1287_v22 = vld [vmem:[%s2689_s3 + $0x300] sm:$0xff] }
  0x5f   : > { %v1517_v26 = vpack.c.bf16 %v1289_v23, %v1287_v22  ;;  %v1320_v22 = vld [vmem:[%s2689_s3 + $0x408] sm:$0xff]  ;;  %v1322_v23 = vld [vmem:[%s2689_s3 + $0x418] sm:$0xff] }
  0x61   : > { %1478 = vmatpush1.bf16.msra.mxu0 %v1477_v27  ;;  %v1519_v27 = vpack.c.bf16 %v1294_v25, %v1292_v24  ;;  %v1611_v24 = vpack.c.bf16 %v1322_v23, %v1320_v22  ;;  %v1316_v25 = vld [vmem:[%s2689_s3 + $0x3e8] sm:$0xff]  ;;  %v1334_v23 = vld [vmem:[%s2689_s3 + $0x478] sm:$0xff] }
  0x62   : > { %1480 = vmatprep.subr.bf16.mxu0 %v1479_v28  ;;  %v1291_v28 = vld [vmem:[%s2689_s3 + $0x320] sm:$0xff]  ;;  %v1332_v22 = vld [vmem:[%s2689_s3 + $0x468] sm:$0xff] }
  0x63   : > { %v1521_v30 = vpack.c.bf16 %v1293_v29, %v1291_v28  ;;  %v1317_v28 = vld [vmem:[%s2689_s3 + $0x3f0] sm:$0xff] }
  0x65   : > { %1482 = vmatpush1.bf16.msra.mxu0 %v1481_v33  ;;  %v1523_v33 = vpack.c.bf16 %v1298_v32, %v1296_v31  ;;  %v2453_v31 = vshrl.u32 %v572_v49, 7 }
  0x66   : > { %1484 = vmatprep.subr.bf16.mxu0 %v1483_v34  ;;  %v1295_v34 = vld [vmem:[%s2689_s3 + $0x340] sm:$0xff] }
  0x67   : > { %v1525_v36 = vpack.c.bf16 %v1297_v35, %v1295_v34  ;;  %v574_v32 = vsub.s32 0, %v2453_v31  ;;  %v578_v34 = vsub.s32 1, %v2453_v31 }
  0x68   : > { %555 = vmatmul.mubr.f32.vlgmr.msra.gmra.mrb[0].mxu0 %v455_v39  ;;  %v1300_v39 = vld [vmem:[%s2689_s3 + $0x368] sm:$0xff] }
  0x69   : > { %560 = vmatprep.mubr.f32.mxu0 %v1708_v7  ;;  %1486 = vmatpush1.bf16.msra.mxu0 %v1485_v40  ;;  %v1595_v40 = vpack.c.bf16 %v678_v38, %v676_v37  ;;  %v1527_v45 = vpack.c.bf16 %v1302_v43, %v1300_v39  ;;  %v683_v7 = vld [vmem:[%s2689_s3 + $0x1c0] sm:$0xff] }
  0x6a   : > { %1488 = vmatprep.subr.bf16.mxu0 %v1487_v41  ;;  %v675_v41 = vld [vmem:[%s2689_s3 + $0x180] sm:$0xff] }
  0x6b   : > { %v1597_v44 = vpack.c.bf16 %v677_v42, %v675_v41  ;;  %1596 = vmatprep.subr.bf16.mxu1 %v1595_v40 }
  0x6c   : > { %561 = vmatmul.mubr.f32.gmra.mrb[2].mxu0 %v456_v46  ;;  %v1299_v46 = vld [vmem:[%s2689_s3 + $0x360] sm:$0xff] }
  0x6d   : > { %1490 = vmatpush1.bf16.msra.mxu0 %v1489_v47  ;;  %v1301_v47 = vld [vmem:[%s2689_s3 + $0x370] sm:$0xff]  ;;  %1598 = vmatpush1.bf16.msra.mxu1 %v1597_v44 }
  0x6e   : > { %1492 = vmatprep.subr.bf16.mxu0 %v1491_v48  ;;  %v1529_v48 = vpack.c.bf16 %v1301_v47, %v1299_v46 }
  0x71   : > { %1494 = vmatpush1.bf16.msra.mxu0 %v1493_v53  ;;  %v1599_v53 = vpack.c.bf16 %v682_v51, %v680_v50 }
  0x72   : > { %1496 = vmatprep.subr.bf16.mxu0 %v1495_v54  ;;  %v679_v54 = vld [vmem:[%s2689_s3 + $0x1a0] sm:$0xff] }
  0x73   : > { %v1601_v57 = vpack.c.bf16 %v681_v55, %v679_v54  ;;  %1600 = vmatprep.subr.bf16.mxu1 %v1599_v53  ;;  %v1319_v54 = vld [vmem:[%s2689_s3 + $0x400] sm:$0xff]  ;;  %v1321_v55 = vld [vmem:[%s2689_s3 + $0x410] sm:$0xff] }
  0x75   : > { %1498 = vmatpush1.bf16.msra.mxu0 %v1497_v59  ;;  %v1303_v59 = vld [vmem:[%s2689_s3 + $0x380] sm:$0xff]  ;;  %1602 = vmatpush1.bf16.msra.mxu1 %v1601_v57  ;;  %v1324_v57 = vld [vmem:[%s2689_s3 + $0x428] sm:$0xff] }
  0x76   : > { %1500 = vmatprep.subr.bf16.mxu0 %v1499_v60  ;;  %v1305_v60 = vld [vmem:[%s2689_s3 + $0x390] sm:$0xff] }
  0x77   : > { %v1533_v61 = vpack.c.bf16 %v1305_v60, %v1303_v59  ;;  %v1613_v59 = vpack.c.bf16 %v1321_v55, %v1319_v54  ;;  %v1323_v60 = vld [vmem:[%s2689_s3 + $0x420] sm:$0xff]  ;;  %v1350_v54 = vld [vmem:[%s2689_s3 + $0x4f8] sm:$0xff] }
  0x79   : > { %1502 = vmatpush1.bf16.msra.mxu0 %v1501_v1  ;;  %v1603_v1 = vpack.c.bf16 %v686_v63, %v684_v62 }
  0x7a   : > { %1504 = vmatprep.subr.bf16.mxu0 %v1503_v2  ;;  %v685_v2 = vld [vmem:[%s2689_s3 + $0x1d0] sm:$0xff] }
  0x7b   : > { %v1605_v4 = vpack.c.bf16 %v685_v2, %v683_v7  ;;  %1604 = vmatprep.subr.bf16.mxu1 %v1603_v1 }
  0x7d   : > { %1506 = vmatpush1.bf16.msra.mxu0 %v1505_v8  ;;  %v1309_v8 = vld [vmem:[%s2689_s3 + $0x3b0] sm:$0xff]  ;;  %1606 = vmatpush1.bf16.msra.mxu1 %v1605_v4 }
  0x7e   : > { %1508 = vmatprep.subr.bf16.mxu0 %v1507_v9  ;;  %v1537_v9 = vpack.c.bf16 %v1309_v8, %v1307_v6  ;;  %1608 = vmatprep.subr.bf16.mxu1 %v1607_v13  ;;  %v1328_v6 = vld [vmem:[%s2689_s3 + $0x448] sm:$0xff]  ;;  %v1330_v8 = vld [vmem:[%s2689_s3 + $0x458] sm:$0xff] }
  0x81   : > { %1510 = vmatpush1.bf16.msra.mxu0 %v1509_v14  ;;  %v687_v14 = vld [vmem:[%s2689_s3 + $0x1e0] sm:$0xff] }
  0x82   : > { %1512 = vmatprep.subr.bf16.mxu0 %v1511_v15  ;;  %v689_v15 = vld [vmem:[%s2689_s3 + $0x1f0] sm:$0xff] }
  0x83   : > { %v1609_v17 = vpack.c.bf16 %v689_v15, %v687_v14  ;;  %v1619_v15 = vpack.c.bf16 %v1330_v8, %v1328_v6  ;;  %v1357_v6 = vld [vmem:[%s2689_s3 + $0x530] sm:$0xff]  ;;  %v1360_v8 = vld [vmem:[%s2689_s3 + $0x548] sm:$0xff] }
  0x85   : > { %1514 = vmatpush1.bf16.msra.mxu0 %v1513_v20  ;;  %v1313_v20 = vld [vmem:[%s2689_s3 + $0x3d0] sm:$0xff]  ;;  %1610 = vmatpush1.bf16.msra.mxu1 %v1609_v17  ;;  %v1327_v17 = vld [vmem:[%s2689_s3 + $0x440] sm:$0xff] }
  0x86   : > { %1516 = vmatprep.subr.bf16.mxu0 %v1515_v21  ;;  %v1541_v21 = vpack.c.bf16 %v1313_v20, %v1311_v19  ;;  %1612 = vmatprep.subr.bf16.mxu1 %v1611_v24 }
  0x89   : > { %1518 = vmatpush1.bf16.msra.mxu0 %v1517_v26  ;;  %v1318_v26 = vld [vmem:[%s2689_s3 + $0x3f8] sm:$0xff] }
  0x8a   : > { %1520 = vmatprep.subr.bf16.mxu0 %v1519_v27  ;;  %v1315_v27 = vld [vmem:[%s2689_s3 + $0x3e0] sm:$0xff]  ;;  %v1543_v29 = vpack.c.bf16 %v1318_v26, %v1316_v25 }
  0x8d   : > { %1522 = vmatpush1.bf16.msra.mxu0 %v1521_v30  ;;  %v1545_v30 = vpack.c.bf16 %v1317_v28, %v1315_v27  ;;  %v1623_v27 = vpack.c.bf16 %v1334_v23, %v1332_v22  ;;  %v1370_v22 = vld [vmem:[%s2689_s3 + $0x598] sm:$0xff] }
  0x8e   : > { %1524 = vmatprep.subr.bf16.mxu0 %v1523_v33  ;;  %v227_v33 = vld [vmem:[%s2688_s2] sm:$0x3] }
  0x8f   : > { %v575_v35 = vrot.slane %v227_v33, %v574_v32 }
  0x91   : > { %1526 = vmatpush1.bf16.msra.mxu0 %v1525_v36  ;;  %v579_v36 = vrot.slane %v227_v33, %v578_v34  ;;  %v1336_v33 = vld [vmem:[%s2689_s3 + $0x488] sm:$0xff] }
  0x92   : > { %1528 = vmatprep.subr.bf16.mxu0 %v1527_v45 }
  0x95   : > { %1530 = vmatpush1.bf16.msra.mxu0 %v1529_v48 }
  0x96   : > { %1532 = vmatprep.subr.bf16.mxu0 %v1531_v58  ;;  %v1326_v58 = vld [vmem:[%s2689_s3 + $0x438] sm:$0xff] }
  0x97   : > { %v1615_v0 = vpack.c.bf16 %v1326_v58, %v1324_v57  ;;  %v1347_v58 = vld [vmem:[%s2689_s3 + $0x4e0] sm:$0xff] }
  0x99   : > { %1534 = vmatpush1.bf16.msra.mxu0 %v1533_v61  ;;  %v1325_v61 = vld [vmem:[%s2689_s3 + $0x430] sm:$0xff] }
  0x9a   : > { %1536 = vmatprep.subr.bf16.mxu0 %v1535_v5  ;;  %v1617_v11 = vpack.c.bf16 %v1325_v61, %v1323_v60  ;;  %v1352_v60 = vld [vmem:[%s2689_s3 + $0x508] sm:$0xff]  ;;  %v1354_v61 = vld [vmem:[%s2689_s3 + $0x518] sm:$0xff] }
  0x9d   : > { %1538 = vmatpush1.bf16.msra.mxu0 %v1537_v9 }
  0x9e   : > { %1540 = vmatprep.subr.bf16.mxu0 %v1539_v18  ;;  %v1329_v18 = vld [vmem:[%s2689_s3 + $0x450] sm:$0xff] }
  0x9f   : > { %v1621_v25 = vpack.c.bf16 %v1329_v18, %v1327_v17 }
  0xa1   : > { %1542 = vmatpush1.bf16.msra.mxu0 %v1541_v21 }
  0xa2   : > { %1544 = vmatprep.subr.bf16.mxu0 %v1543_v29  ;;  %v1331_v29 = vld [vmem:[%s2689_s3 + $0x460] sm:$0xff] }
  0xa5   : > { %1546 = vmatpush1.bf16.msra.mxu0 %v1545_v30  ;;  %v1333_v30 = vld [vmem:[%s2689_s3 + $0x470] sm:$0xff] }
 0x13b   : > { %v556_v37 = vpop.f32.mrb[0].mxu0 }
 0x13c   : > { %v582_v38 = vadd.f32 %v575_v35, %v556_v37  ;;  %v558_v39 = vpop.f32.mrb[1].mxu0 }
 0x13d   : > { %v583_v40 = vadd.f32 %v579_v36, %v558_v39  ;;  %v1337_v39 = vld [vmem:[%s2689_s3 + $0x490] sm:$0xff] }
 0x13e   : > { %v586_v41 = vmax.f32 %v582_v38, 0.0  ;;  %v1335_v38 = vld [vmem:[%s2689_s3 + $0x480] sm:$0xff] }
 0x13f   : > { %v587_v42 = vmax.f32 %v583_v40, 0.0  ;;  %v562_v43 = vpop.f32.mrb[2].mxu0  ;;  %v1340_v40 = vld [vmem:[%s2689_s3 + $0x4a8] sm:$0xff] }
 0x140   : > { %v605_v44 = vrot.slane %v586_v41, 7  ;;  %v584_v45 = vadd.f32 %v575_v35, %v562_v43  ;;  %v564_v46 = vpop.f32.mrb[3].mxu0  ;;  %v1338_v35 = vld [vmem:[%s2689_s3 + $0x498] sm:$0xff] }
 0x141   : > { %v606_v47 = vrot.slane %v587_v42, 7  ;;  %v585_v48 = vadd.f32 %v579_v36, %v564_v46  ;;  %v1625_v36 = vpack.c.bf16 %v1333_v30, %v1331_v29  ;;  %v1627_v37 = vpack.c.bf16 %v1338_v35, %v1336_v33  ;;  %v1342_v41 = vld [vmem:[%s2689_s3 + $0x4b8] sm:$0xff]  ;;  %v1344_v46 = vld [vmem:[%s2689_s3 + $0x4c8] sm:$0xff]  ;;  %v1371_v33 = vld [vmem:[%s2689_s3 + $0x5a0] sm:$0xff] }
 0x142   : > { %617 = vst [vmem:[#allocation3] sm:$0xfe] %v605_v44  ;;  %v588_v49 = vmax.f32 %v584_v45, 0.0  ;;  %v1629_v42 = vpack.c.bf16 %v1337_v39, %v1335_v38  ;;  %v1631_v43 = vpack.c.bf16 %v1342_v41, %v1340_v40  ;;  %v1341_v45 = vld [vmem:[%s2689_s3 + $0x4b0] sm:$0xff]  ;;  %v1375_v40 = vld [vmem:[%s2689_s3 + $0x5c0] sm:$0xff] }
 0x143   : > { %618 = vst [vmem:[#allocation3 + $0x8] sm:$0xfe] %v606_v47  ;;  %v589_v50 = vmax.f32 %v585_v48, 0.0  ;;  %v1373_v35 = vld [vmem:[%s2689_s3 + $0x5b0] sm:$0xff] }
 0x144   : > { %v607_v51 = vrot.slane %v588_v49, 7  ;;  %v1665_v38 = vpack.c.bf16 %v1373_v35, %v1371_v33  ;;  %v1377_v41 = vld [vmem:[%s2689_s3 + $0x5d0] sm:$0xff] }
 0x145   : > { %v609_v52 = vrot.slane %v589_v50, 7  ;;  %v1343_v50 = vld [vmem:[%s2689_s3 + $0x4c0] sm:$0xff] }
 0x146   : > { %v2464_v53 = vsel %vm604_vm1, %v605_v44, %v607_v51  ;;  %621 = vst [vmem:[#allocation3 + $0x20] sm:$0x1] %v607_v51  ;;  %v1339_v44 = vld [vmem:[%s2689_s3 + $0x4a0] sm:$0xff]  ;;  %v1345_v51 = vld [vmem:[%s2689_s3 + $0x4d0] sm:$0xff] }
 0x147   : > { %v2472_v56 = vsel %vm604_vm1, %v606_v47, %v609_v52  ;;  %622 = vst [vmem:[#allocation3 + $0x28] sm:$0x1] %v609_v52  ;;  %v768_v9 = vrot.slane %v2464_v53, 1  ;;  %v1346_v47 = vld [vmem:[%s2689_s3 + $0x4d8] sm:$0xff]  ;;  %v1633_v48 = vpack.c.bf16 %v1341_v45, %v1339_v44  ;;  %v1348_v52 = vld [vmem:[%s2689_s3 + $0x4e8] sm:$0xff]  ;;  %v1637_v55 = vpack.c.bf16 %v1345_v51, %v1343_v50 }
 0x148   : > { %v771_v4 = vrot.slane %v2472_v56, 1  ;;  %v1013_v14 = vrot.slane %v2472_v56, 2  ;;  %v1635_v49 = vpack.c.bf16 %v1346_v47, %v1344_v46  ;;  %v1639_v57 = vpack.c.bf16 %v1350_v54, %v1348_v52  ;;  %v1379_v46 = vld [vmem:[%s2689_s3 + $0x5e0] sm:$0xff]  ;;  %v1381_v47 = vld [vmem:[%s2689_s3 + $0x5f0] sm:$0xff] }
 0x149   : > { %v691_v62 = vld [vmem:[#allocation3] sm:$0xfe]  ;;  %v1669_v44 = vpack.c.bf16 %v1377_v41, %v1375_v40 }
 0x14a   : > { %v624_v63 = vld [vmem:[#allocation3 + $0x8] sm:$0xff]  ;;  %v767_v2 = vrot.slane %v691_v62, 1  ;;  %v623_v3 = vld [vmem:[#allocation3] sm:$0xff] }
 0x14b   : > { %v692_v1 = vld [vmem:[#allocation3 + $0x8] sm:$0xfe]  ;;  %922 = vmatprep.mubr.f32.mxu1 %v624_v63  ;;  %v1643_v63 = vpack.c.bf16 %v1354_v61, %v1352_v60 }
 0x14c   : > { %v936_v7 = vld [vmem:[#allocation3 + $0x8] sm:$0xfc]  ;;  %v770_v5 = vrot.slane %v692_v1, 1  ;;  %923 = vmatmul.mubr.f32.vlgmr.msra.gmra.mrb[0].mxu1 %v623_v3  ;;  %v769_v16 = vsel %vm766_vm2, %v767_v2, %v768_v9  ;;  %v1353_v1 = vld [vmem:[%s2689_s3 + $0x510] sm:$0xff]  ;;  %v1358_v2 = vld [vmem:[%s2689_s3 + $0x538] sm:$0xff] }
 0x14d   : > { %v1012_v10 = vrot.slane %v936_v7, 2  ;;  %1614 = vmatpush1.bf16.msra.mxu1 %v1613_v59  ;;  %928 = vmatprep.mubr.f32.mxu1 %v2472_v56  ;;  %v693_v13 = vld [vmem:[#allocation3 + $0x20] sm:$0x1]  ;;  %v1349_v59 = vld [vmem:[%s2689_s3 + $0x4f0] sm:$0xff]  ;;  %v1356_v7 = vld [vmem:[%s2689_s3 + $0x528] sm:$0xff] }
 0x14e   : > { %v772_v12 = vsel %vm766_vm2, %v770_v5, %v771_v4  ;;  %1616 = vmatprep.subr.bf16.mxu1 %v1615_v0  ;;  %v694_v19 = vld [vmem:[#allocation3 + $0x28] sm:$0x1]  ;;  %v773_v20 = vrot.slane %v693_v13, 1  ;;  %v1641_v62 = vpack.c.bf16 %v1349_v59, %v1347_v58  ;;  %v1361_v13 = vld [vmem:[%s2689_s3 + $0x550] sm:$0xff]  ;;  %v937_v54 = vld [vmem:[#allocation3 + $0x20] sm:$0x3] }
 0x14f   : > { %845 = vmatprep.mubr.f32.mxu0 %v772_v12  ;;  %v775_v21 = vrot.slane %v694_v19, 1  ;;  %v1014_v24 = vsel %vm1008_vm3, %v1012_v10, %v1013_v14  ;;  %v1351_v0 = vld [vmem:[%s2689_s3 + $0x500] sm:$0xff]  ;;  %v1015_v58 = vrot.slane %v937_v54, 2 }
 0x150   : > { %846 = vmatmul.mubr.f32.vlgmr.msra.gmra.mrb[4].mxu0 %v769_v16  ;;  %929 = vmatmul.mubr.f32.gmra.mrb[2].mxu1 %v2464_v53  ;;  %v774_v28 = vsel %vm766_vm2, %v768_v9, %v773_v20  ;;  %v1645_v3 = vpack.c.bf16 %v1353_v1, %v1351_v0  ;;  %v1355_v5 = vld [vmem:[%s2689_s3 + $0x520] sm:$0xff]  ;;  %v1362_v9 = vld [vmem:[%s2689_s3 + $0x558] sm:$0xff]  ;;  %v1365_v20 = vld [vmem:[%s2689_s3 + $0x570] sm:$0xff] }
 0x151   : > { %1618 = vmatpush1.bf16.msra.mxu1 %v1617_v11  ;;  %1087 = vmatprep.mubr.f32.mxu1 %v1014_v24  ;;  %v776_v26 = vsel %vm766_vm2, %v771_v4, %v775_v21  ;;  %v1647_v4 = vpack.c.bf16 %v1358_v2, %v1356_v7  ;;  %v1649_v10 = vpack.c.bf16 %v1357_v6, %v1355_v5  ;;  %v1359_v12 = vld [vmem:[%s2689_s3 + $0x540] sm:$0xff]  ;;  %v1366_v16 = vld [vmem:[%s2689_s3 + $0x578] sm:$0xff]  ;;  %v1368_v21 = vld [vmem:[%s2689_s3 + $0x588] sm:$0xff] }
 0x152   : > { %1620 = vmatprep.subr.bf16.mxu1 %v1619_v15  ;;  %851 = vmatprep.mubr.f32.mxu0 %v776_v26  ;;  %v1651_v11 = vpack.c.bf16 %v1362_v9, %v1360_v8  ;;  %v1364_v15 = vld [vmem:[%s2689_s3 + $0x568] sm:$0xff]  ;;  %v1653_v17 = vpack.c.bf16 %v1361_v13, %v1359_v12  ;;  %v1363_v19 = vld [vmem:[%s2689_s3 + $0x560] sm:$0xff]  ;;  %v1659_v24 = vpack.c.bf16 %v1370_v22, %v1368_v21  ;;  %v1369_v26 = vld [vmem:[%s2689_s3 + $0x590] sm:$0xff] }
 0x153   : > { %v1655_v18 = vpack.c.bf16 %v1366_v16, %v1364_v15  ;;  %v1657_v23 = vpack.c.bf16 %v1365_v20, %v1363_v19  ;;  %v938_v50 = vld [vmem:[#allocation3 + $0x28] sm:$0x3] }
 0x154   : > { %852 = vmatmul.mubr.f32.gmra.mrb[6].mxu0 %v774_v28  ;;  %v1374_v28 = vld [vmem:[%s2689_s3 + $0x5b8] sm:$0xff]  ;;  %v1017_v52 = vrot.slane %v938_v50, 2 }
 0x155   : > { %1622 = vmatpush1.bf16.msra.mxu1 %v1621_v25  ;;  %v1367_v25 = vld [vmem:[%s2689_s3 + $0x580] sm:$0xff] }
 0x156   : > { %1624 = vmatprep.subr.bf16.mxu1 %v1623_v27  ;;  %v1372_v27 = vld [vmem:[%s2689_s3 + $0x5a8] sm:$0xff]  ;;  %v1661_v29 = vpack.c.bf16 %v1369_v26, %v1367_v25  ;;  %v1018_v59 = vsel %vm1008_vm3, %v1013_v14, %v1017_v52 }
 0x157   : > { %v1663_v30 = vpack.c.bf16 %v1374_v28, %v1372_v27 }
 0x159   : > { %1626 = vmatpush1.bf16.msra.mxu1 %v1625_v36  ;;  %v1376_v36 = vld [vmem:[%s2689_s3 + $0x5c8] sm:$0xff] }
 0x15a   : > { %1628 = vmatprep.subr.bf16.mxu1 %v1627_v37  ;;  %v1378_v37 = vld [vmem:[%s2689_s3 + $0x5d8] sm:$0xff] }
 0x15b   : > { %v1667_v39 = vpack.c.bf16 %v1378_v37, %v1376_v36 }
 0x15d   : > { %1630 = vmatpush1.bf16.msra.mxu1 %v1629_v42  ;;  %v1380_v42 = vld [vmem:[%s2689_s3 + $0x5e8] sm:$0xff] }
 0x15e   : > { %1632 = vmatprep.subr.bf16.mxu1 %v1631_v43  ;;  %v1382_v43 = vld [vmem:[%s2689_s3 + $0x5f8] sm:$0xff] }
 0x15f   : > { %v1671_v45 = vpack.c.bf16 %v1382_v43, %v1380_v42 }
 0x161   : > { %1634 = vmatpush1.bf16.msra.mxu1 %v1633_v48  ;;  %v935_v48 = vld [vmem:[#allocation3] sm:$0xfc] }
 0x162   : > { %1636 = vmatprep.subr.bf16.mxu1 %v1635_v49  ;;  %v1673_v49 = vpack.c.bf16 %v1381_v47, %v1379_v46  ;;  %v1009_v51 = vrot.slane %v935_v48, 2 }
 0x165   : > { %1638 = vmatpush1.bf16.msra.mxu1 %v1637_v55  ;;  %v1010_v55 = vrot.slane %v2464_v53, 2  ;;  %v590_v53 = vld [vmem:[%s2690_s4] sm:$0x3] }
 0x166   : > { %1640 = vmatprep.subr.bf16.mxu1 %v1639_v57  ;;  %v1108_v1 = vrot.slane %v590_v53, %v574_v32  ;;  %v1112_v56 = vrot.slane %v590_v53, %v578_v34 }
 0x167   : > { %v1011_v57 = vsel %vm1008_vm3, %v1009_v51, %v1010_v55  ;;  %v1016_v60 = vsel %vm1008_vm3, %v1010_v55, %v1015_v58 }
 0x169   : > { %1642 = vmatpush1.bf16.msra.mxu1 %v1641_v62 }
 0x16a   : > { %1644 = vmatprep.subr.bf16.mxu1 %v1643_v63 }
 0x16d   : > { %1646 = vmatpush1.bf16.msra.mxu1 %v1645_v3 }
 0x16e   : > { %1648 = vmatprep.subr.bf16.mxu1 %v1647_v4 }
 0x171   : > { %1650 = vmatpush1.bf16.msra.mxu1 %v1649_v10 }
 0x172   : > { %1652 = vmatprep.subr.bf16.mxu1 %v1651_v11 }
 0x175   : > { %1654 = vmatpush1.bf16.msra.mxu1 %v1653_v17 }
 0x176   : > { %1656 = vmatprep.subr.bf16.mxu1 %v1655_v18 }
 0x179   : > { %1658 = vmatpush1.bf16.msra.mxu1 %v1657_v23 }
 0x17a   : > { %1660 = vmatprep.subr.bf16.mxu1 %v1659_v24 }
 0x17d   : > { %1662 = vmatpush1.bf16.msra.mxu1 %v1661_v29 }
 0x17e   : > { %1664 = vmatprep.subr.bf16.mxu1 %v1663_v30 }
 0x181   : > { %1666 = vmatpush1.bf16.msra.mxu1 %v1665_v38 }
 0x182   : > { %1668 = vmatprep.subr.bf16.mxu1 %v1667_v39 }
 0x185   : > { %1670 = vmatpush1.bf16.msra.mxu1 %v1669_v44 }
 0x186   : > { %1672 = vmatprep.subr.bf16.mxu1 %v1671_v45 }
 0x189   : > { %1674 = vmatpush1.bf16.msra.mxu1 %v1673_v49 }
 0x18c   : > { %1088 = vmatmul.mubr.f32.vlgmr.msra.gmra.mrb[0].mxu1 %v1011_v57 }
 0x18d   : > { %1093 = vmatprep.mubr.f32.mxu1 %v1018_v59 }
 0x190   : > { %1094 = vmatmul.mubr.f32.gmra.mrb[2].mxu1 %v1016_v60 }
 0x223   : > { %v847_v61 = vpop.f32.mrb[4].mxu0 }
 0x224   : > { %v849_v62 = vpop.f32.mrb[5].mxu0 }
 0x227   : > { %v853_v63 = vpop.f32.mrb[6].mxu0 }
 0x228   : > { %v855_v0 = vpop.f32.mrb[7].mxu0 }
 0x25f   : > { %v1089_v7 = vpop.f32.mrb[0].mxu1 }
 0x260   : > { %v1675_v14 = vadd.f32 %v1089_v7, %v847_v61  ;;  %v1091_v2 = vpop.f32.mrb[1].mxu1 }
 0x261   : > { %v1676_v3 = vadd.f32 %v1091_v2, %v849_v62 }
 0x262   : > { %v1115_v4 = vadd.f32 %v1675_v14, %v1108_v1 }
 0x263   : > { %v1116_v5 = vadd.f32 %v1676_v3, %v1112_v56  ;;  %v1095_v6 = vpop.f32.mrb[2].mxu1 }
 0x264   : > { %v1119_v8 = vmax.f32 %v1115_v4, 0.0  ;;  %v1677_v9 = vadd.f32 %v1095_v6, %v853_v63  ;;  %v1097_v10 = vpop.f32.mrb[3].mxu1 }
 0x265   : > { %v1120_v11 = vmax.f32 %v1116_v5, 0.0  ;;  %v1678_v32 = vadd.f32 %v1097_v10, %v855_v0 }
 0x266   : > { %1123 = vst [vmem:[%s224_s9] sm:$0xff] %v1119_v8  ;;  %v1117_v12 = vadd.f32 %v1677_v9, %v1108_v1 }
 0x267   : > { %1124 = vst [vmem:[%s224_s9 + $0x8] sm:$0xff] %v1120_v11  ;;  %v1118_v31 = vadd.f32 %v1678_v32, %v1112_v56 }
 0x268   : > { %v1121_v34 = vmax.f32 %v1117_v12, 0.0 }
 0x269   : > { %v1122_v13 = vmax.f32 %v1118_v31, 0.0 }
 0x26a   : > { %1125 = vst [vmem:[%s224_s9 + $0x10] sm:$0xff] %v1121_v34 }
 0x26b   : > { %1126 = vst [vmem:[%s224_s9 + $0x18] sm:$0xff] %v1122_v13 }
 0x26c PF: > { %s15_s18 = sadd.s32 1, %s1706_s18  }
 0x26d   : > { %p12_p4 = scmp.ge.s32.totalorder %s15_s18, 4  }
 0x26f   :  { %14 = sbr.rel (!%p12_p4) target bundleno = 1 (0x1), region = 75 }

</bundles_post_ra>
